<compile_context>
chip_gen: v6e
topology: v6e:2x2x1
jax: 0.10.0
libtpu: 0.0.40
codegen_flags: <defaults>
</compile_context>

<pallas_src>
import functools

import jax
import jax.numpy as jnp
import numpy as np
from jax import lax
from jax.experimental import pallas as pl
from jax.experimental.pallas import tpu as pltpu


# ----------------------------------------------------------------------------
# Small helpers
# ----------------------------------------------------------------------------
def _round_up(x, m):
    return ((x + m - 1) // m) * m


def _add_tree(vals):
    """Balanced elementwise-add tree (halves the dependent-op chain)."""
    vals = list(vals)
    while len(vals) > 1:
        nxt = [vals[i] + vals[i + 1] for i in range(0, len(vals) - 1, 2)]
        if len(vals) % 2:
            nxt.append(vals[-1])
        vals = nxt
    return vals[0]


def _max_tree(vals):
    """Balanced elementwise-maximum tree (pure VPU)."""
    vals = list(vals)
    while len(vals) > 1:
        nxt = [jnp.maximum(vals[i], vals[i + 1]) for i in range(0, len(vals) - 1, 2)]
        if len(vals) % 2:
            nxt.append(vals[-1])
        vals = nxt
    return vals[0]


# ----------------------------------------------------------------------------
# Pallas kernel: conv1 -> pool -> conv2 -> pool -> fc1 -> fc2 for one lane tile
# ----------------------------------------------------------------------------
def tinynet_kernel(x_ref,                      # VMEM (7, 7, TN) f32  (pooled input, batch on lanes)
                   w1_ref, b1_ref,             # SMEM (8,), (2,)   conv1 OIHW flat
                   w2_ref, b2_ref,             # SMEM (16,), (2,)  conv2 OIHW flat
                   fc1w_ref, fc1b_ref,         # SMEM (4,), (2,)   fc1 row-major
                   fc2w0_ref, fc2w1_ref, fc2b_ref,  # VMEM (10, 1) each
                   out_ref):                   # VMEM (10, TN) f32  (lane-dense)

    def conv1_row(a):
        """ReLU(conv1) output row a (0..5) for both channels -> [(6,TN), (6,TN)].

        Only the two input rows a, a+1 are live; the dj=1 taps are bound once
        per row and reused by both output channels.
        """
        r0 = x_ref[a]          # (7, TN)
        r1 = x_ref[a + 1]      # (7, TN)
        # tap order t = di*2 + dj matches the OIHW flattening of w1.
        taps = (r0[0:6, :], r0[1:7, :], r1[0:6, :], r1[1:7, :])
        outs = []
        for o in range(2):
            acc = _add_tree([taps[t] * w1_ref[o * 4 + t] for t in range(4)])
            outs.append(jnp.maximum(acc + b1_ref[o], 0.0))            # (6, TN)
        return outs

    # ---- conv1 + ReLU + max_pool2d(2,2), fused row-by-row: 7x7 -> 3x3 ----
    # p2[c][alpha][beta] : (1, TN) per-pixel rows (batch stays dense on lanes)
    p2 = [[[None] * 3 for _ in range(3)] for _ in range(2)]
    for alpha in range(3):
        r_a = conv1_row(2 * alpha)
        r_b = conv1_row(2 * alpha + 1)
        for c in range(2):
            rh = jnp.maximum(r_a[c], r_b[c])                           # (6, TN)
            for beta in range(3):
                p2[c][alpha][beta] = jnp.maximum(
                    rh[2 * beta:2 * beta + 1, :],
                    rh[2 * beta + 1:2 * beta + 2, :])                  # (1, TN)

    # ---- conv2 (2 -> 2 ch, 2x2, stride 1) + bias + ReLU: 3x3 -> 2x2 ------
    c2 = []                                                            # c2[o] : 4 x (1, TN)
    for o in range(2):
        pix = []
        for i in range(2):
            for j in range(2):
                terms = [p2[c][i + di][j + dj] *
                         w2_ref[((o * 2 + c) * 2 + di) * 2 + dj]
                         for c in range(2) for di in range(2) for dj in range(2)]
                pix.append(jnp.maximum(_add_tree(terms) + b2_ref[o], 0.0))
        c2.append(pix)

    # ---- max_pool2d(2,2): 2x2 -> 1x1, flatten -> 2 features per image ----
    f = [_max_tree(c2[o]) for o in range(2)]                           # 2 x (1, TN)

    # ---- fc1 + ReLU: VPU broadcast-FMAs (K=2, deliberately no MXU) -------
    h = []
    for j in range(2):
        acc = fc1w_ref[j * 2] * f[0] + fc1w_ref[j * 2 + 1] * f[1] + fc1b_ref[j]
        h.append(jnp.maximum(acc, 0.0))                                # (1, TN)

    # ---- fc2: (10,1) weight columns broadcast against (1,TN) activations -
    out_ref[...] = fc2w0_ref[...] * h[0] + fc2w1_ref[...] * h[1] + fc2b_ref[...]


# ----------------------------------------------------------------------------
# Wrapper: wrapper-side 4x4 pool + cheap transpose + batch-tiled pallas_call
# ----------------------------------------------------------------------------
@functools.partial(jax.jit, static_argnames=("tile_n",))
def tinynet_forward(x_nchw, params, *, tile_n=2048):
    n = x_nchw.shape[0]

    # Stage 1 (plain XLA, near HBM roofline): 4x4/stride-4 max pool on the
    # natural NCHW layout, then transpose only the *pooled* (N,7,7) -> (7,7,N)
    # so the kernel streams batch-on-lanes without re-laying-out the raw 28x28.
    pooled = lax.reduce_window(x_nchw, -jnp.inf, lax.max,
                               (1, 1, 4, 4), (1, 1, 4, 4), "VALID")     # (N,1,7,7)
    xp = pooled[:, 0, :, :].transpose(1, 2, 0)                          # (7,7,N)

    # Lane tile: always a multiple of 128; guarantee >= 2 grid steps whenever
    # the padded batch allows it (keeps v7x's 2nd TensorCore busy and restores
    # DMA/compute overlap for small/medium batches).
    n128 = _round_up(n, 128)
    tn = min(_round_up(max(int(tile_n), 128), 128), n128)
    min_steps = 2
    if n128 >= min_steps * 128:
        tn = min(tn, _round_up((n128 + min_steps - 1) // min_steps, 128))
    n_pad = _round_up(n, tn)
    grid = (n_pad // tn,)

    if n_pad != n:
        xp = jnp.pad(xp, ((0, 0), (0, 0), (0, n_pad - n)))

    # Parameter plumbing (layout only, no compute).
    w1f = params["w1"].reshape(-1)                            # (8,)  conv1 OIHW
    w2f = params["w2"].reshape(-1)                            # (16,) conv2 OIHW
    fc1wf = params["fc1_w"].reshape(-1)                       # (4,)  row-major
    fc2w0 = params["fc2_w"][:, 0:1]                           # (10, 1)
    fc2w1 = params["fc2_w"][:, 1:2]                           # (10, 1)
    fc2bc = params["fc2_b"].reshape(10, 1)                    # (10, 1)

    smem = pltpu.MemorySpace.SMEM
    vmem = pltpu.MemorySpace.VMEM

    def smem_spec(size):
        return pl.BlockSpec((size,), lambda i: (0,), memory_space=smem)

    def const_vmem_spec(shape):
        return pl.BlockSpec(shape, lambda i: (0, 0), memory_space=vmem)

    # ~1k VPU flops and ~240 bytes of kernel-side HBM traffic per image.
    cost = pl.CostEstimate(flops=1000 * n_pad, transcendentals=0,
                           bytes_accessed=240 * n_pad)

    y = pl.pallas_call(
        tinynet_kernel,
        out_shape=jax.ShapeDtypeStruct((10, n_pad), jnp.float32),
        grid=grid,
        in_specs=[
            pl.BlockSpec((7, 7, tn), lambda i: (0, 0, i)),            # pooled x stream
            smem_spec(8), smem_spec(2),                               # conv1 w, b
            smem_spec(16), smem_spec(2),                              # conv2 w, b
            smem_spec(4), smem_spec(2),                               # fc1 w, b
            const_vmem_spec((10, 1)),                                 # fc2 w[:,0]
            const_vmem_spec((10, 1)),                                 # fc2 w[:,1]
            const_vmem_spec((10, 1)),                                 # fc2 b
        ],
        out_specs=pl.BlockSpec((10, tn), lambda i: (0, i)),           # lane-dense out
        compiler_params=pltpu.CompilerParams(
            dimension_semantics=("parallel",)),
        cost_estimate=cost,
    )(xp, w1f, params["b1"], w2f, params["b2"], fc1wf, params["fc1_b"],
      fc2w0, fc2w1, fc2bc)

    # (10, N_pad) -> (N, 10): drop lane padding, transpose in the wrapper.
    return y[:, :n].T


# ----------------------------------------------------------------------------
# Pure-JAX reference (mirrors the PyTorch forward exactly)
# ----------------------------------------------------------------------------
def tinynet_reference(x, params):
    def pool(v, k):
        return lax.reduce_window(v, -jnp.inf, lax.max,
                                 (1, 1, k, k), (1, 1, k, k), "VALID")

    def conv(v, w, b):
        y = lax.conv_general_dilated(v, w, (1, 1), "VALID",
                                     dimension_numbers=("NCHW", "OIHW", "NCHW"))
        return y + b[None, :, None, None]

    h = pool(x, 4)
    h = jax.nn.relu(conv(h, params["w1"], params["b1"]))
    h = pool(h, 2)
    h = jax.nn.relu(conv(h, params["w2"], params["b2"]))
    h = pool(h, 2)
    h = h.reshape(h.shape[0], -1)
    h = jax.nn.relu(h @ params["fc1_w"].T + params["fc1_b"])
    return h @ params["fc2_w"].T + params["fc2_b"]


# ----------------------------------------------------------------------------
# Main
# ----------------------------------------------------------------------------
if __name__ == "__main__":
    key = jax.random.PRNGKey(0)
    kx, k1, k2, k3, k4, k5, k6, k7, k8 = jax.random.split(key, 9)

    # TinyNet requires 28x28 inputs so the final view(-1, 2*1*1) is exact.
    batch = 2
    x = jax.random.normal(kx, (batch, 1, 28, 28), dtype=jnp.float32)

    params = {
        "w1": 0.3 * jax.random.normal(k1, (2, 1, 2, 2), jnp.float32),   # Conv2d(1, 2, 2)
        "b1": 0.1 * jax.random.normal(k2, (2,), jnp.float32),
        "w2": 0.3 * jax.random.normal(k3, (2, 2, 2, 2), jnp.float32),   # Conv2d(2, 2, 2)
        "b2": 0.1 * jax.random.normal(k4, (2,), jnp.float32),
        "fc1_w": 0.3 * jax.random.normal(k5, (2, 2), jnp.float32),      # Linear(2, 2)
        "fc1_b": 0.1 * jax.random.normal(k6, (2,), jnp.float32),
        "fc2_w": 0.3 * jax.random.normal(k7, (10, 2), jnp.float32),     # Linear(2, 10)
        "fc2_b": 0.1 * jax.random.normal(k8, (10,), jnp.float32),
    }

    out = tinynet_forward(x, params)
    out = jax.block_until_ready(out)

    ref = tinynet_reference(x, params)
    np.testing.assert_allclose(np.asarray(out), np.asarray(ref), rtol=1e-4, atol=1e-4)
    assert out.shape == (batch, 10)

    print("KERNEL_OK")
</pallas_src>

<mosaic_0001>
module attributes {stable_mosaic.version = 11 : i64} {
  func.func @tinynet_kernel(%arg0: i32, %arg1: memref<7x7x128xf32, #tpu.memory_space<vmem>>, %arg2: memref<8xf32, #tpu.memory_space<smem>>, %arg3: memref<2xf32, #tpu.memory_space<smem>>, %arg4: memref<16xf32, #tpu.memory_space<smem>>, %arg5: memref<2xf32, #tpu.memory_space<smem>>, %arg6: memref<4xf32, #tpu.memory_space<smem>>, %arg7: memref<2xf32, #tpu.memory_space<smem>>, %arg8: memref<10x1xf32, #tpu.memory_space<vmem>>, %arg9: memref<10x1xf32, #tpu.memory_space<vmem>>, %arg10: memref<10x1xf32, #tpu.memory_space<vmem>>, %arg11: memref<10x128xf32, #tpu.memory_space<vmem>>) attributes {dimension_semantics = [#tpu.dimension_semantics<parallel>], iteration_bounds = array<i64: 1>, scalar_prefetch = 0 : i64, scratch_operands = 0 : i64, tpu.core_type = #tpu.core_type<tc>, window_params = [{transform_indices = @transform_0, window_bounds = array<i64: 7, 7, 128>}, {transform_indices = @transform_1, window_bounds = array<i64: 8>}, {transform_indices = @transform_2, window_bounds = array<i64: 2>}, {transform_indices = @transform_3, window_bounds = array<i64: 16>}, {transform_indices = @transform_4, window_bounds = array<i64: 2>}, {transform_indices = @transform_5, window_bounds = array<i64: 4>}, {transform_indices = @transform_6, window_bounds = array<i64: 2>}, {pipeline_mode = #tpu.pipeline_mode<synchronous>, transform_indices = @transform_7, window_bounds = array<i64: 10, 1>}, {pipeline_mode = #tpu.pipeline_mode<synchronous>, transform_indices = @transform_8, window_bounds = array<i64: 10, 1>}, {pipeline_mode = #tpu.pipeline_mode<synchronous>, transform_indices = @transform_9, window_bounds = array<i64: 10, 1>}, {transform_indices = @transform_10, window_bounds = array<i64: 10, 128>}]} {
    %c0 = arith.constant 0 : index
    %c0_0 = arith.constant 0 : index
    %c0_1 = arith.constant 0 : index
    %0 = vector.load %arg1[%c0, %c0_0, %c0_1] : memref<7x7x128xf32, #tpu.memory_space<vmem>>, vector<1x7x128xf32>
    %1 = vector.shape_cast %0 : vector<1x7x128xf32> to vector<7x128xf32>
    %c1 = arith.constant 1 : index
    %c0_2 = arith.constant 0 : index
    %c0_3 = arith.constant 0 : index
    %2 = vector.load %arg1[%c1, %c0_2, %c0_3] : memref<7x7x128xf32, #tpu.memory_space<vmem>>, vector<1x7x128xf32>
    %3 = vector.shape_cast %2 : vector<1x7x128xf32> to vector<7x128xf32>
    %4 = vector.extract_strided_slice %1 {offsets = [0, 0], sizes = [6, 128], strides = [1, 1]} : vector<7x128xf32> to vector<6x128xf32>
    %5 = vector.extract_strided_slice %1 {offsets = [1, 0], sizes = [6, 128], strides = [1, 1]} : vector<7x128xf32> to vector<6x128xf32>
    %6 = vector.extract_strided_slice %3 {offsets = [0, 0], sizes = [6, 128], strides = [1, 1]} : vector<7x128xf32> to vector<6x128xf32>
    %7 = vector.extract_strided_slice %3 {offsets = [1, 0], sizes = [6, 128], strides = [1, 1]} : vector<7x128xf32> to vector<6x128xf32>
    %c0_4 = arith.constant 0 : index
    %8 = memref.load %arg2[%c0_4] : memref<8xf32, #tpu.memory_space<smem>>
    %9 = vector.broadcast %8 : f32 to vector<6x128xf32>
    %10 = arith.mulf %4, %9 : vector<6x128xf32>
    %c1_5 = arith.constant 1 : index
    %11 = memref.load %arg2[%c1_5] : memref<8xf32, #tpu.memory_space<smem>>
    %12 = vector.broadcast %11 : f32 to vector<6x128xf32>
    %13 = arith.mulf %5, %12 : vector<6x128xf32>
    %c2 = arith.constant 2 : index
    %14 = memref.load %arg2[%c2] : memref<8xf32, #tpu.memory_space<smem>>
    %15 = vector.broadcast %14 : f32 to vector<6x128xf32>
    %16 = arith.mulf %6, %15 : vector<6x128xf32>
    %c3 = arith.constant 3 : index
    %17 = memref.load %arg2[%c3] : memref<8xf32, #tpu.memory_space<smem>>
    %18 = vector.broadcast %17 : f32 to vector<6x128xf32>
    %19 = arith.mulf %7, %18 : vector<6x128xf32>
    %20 = arith.addf %10, %13 : vector<6x128xf32>
    %21 = arith.addf %16, %19 : vector<6x128xf32>
    %22 = arith.addf %20, %21 : vector<6x128xf32>
    %c0_6 = arith.constant 0 : index
    %23 = memref.load %arg3[%c0_6] : memref<2xf32, #tpu.memory_space<smem>>
    %24 = vector.broadcast %23 : f32 to vector<6x128xf32>
    %25 = arith.addf %22, %24 : vector<6x128xf32>
    %cst = arith.constant 0.000000e+00 : f32
    %26 = vector.broadcast %cst : f32 to vector<6x128xf32>
    %27 = arith.maximumf %25, %26 : vector<6x128xf32>
    %c4 = arith.constant 4 : index
    %28 = memref.load %arg2[%c4] : memref<8xf32, #tpu.memory_space<smem>>
    %29 = vector.broadcast %28 : f32 to vector<6x128xf32>
    %30 = arith.mulf %4, %29 : vector<6x128xf32>
    %c5 = arith.constant 5 : index
    %31 = memref.load %arg2[%c5] : memref<8xf32, #tpu.memory_space<smem>>
    %32 = vector.broadcast %31 : f32 to vector<6x128xf32>
    %33 = arith.mulf %5, %32 : vector<6x128xf32>
    %c6 = arith.constant 6 : index
    %34 = memref.load %arg2[%c6] : memref<8xf32, #tpu.memory_space<smem>>
    %35 = vector.broadcast %34 : f32 to vector<6x128xf32>
    %36 = arith.mulf %6, %35 : vector<6x128xf32>
    %c7 = arith.constant 7 : index
    %37 = memref.load %arg2[%c7] : memref<8xf32, #tpu.memory_space<smem>>
    %38 = vector.broadcast %37 : f32 to vector<6x128xf32>
    %39 = arith.mulf %7, %38 : vector<6x128xf32>
    %40 = arith.addf %30, %33 : vector<6x128xf32>
    %41 = arith.addf %36, %39 : vector<6x128xf32>
    %42 = arith.addf %40, %41 : vector<6x128xf32>
    %c1_7 = arith.constant 1 : index
    %43 = memref.load %arg3[%c1_7] : memref<2xf32, #tpu.memory_space<smem>>
    %44 = vector.broadcast %43 : f32 to vector<6x128xf32>
    %45 = arith.addf %42, %44 : vector<6x128xf32>
    %cst_8 = arith.constant 0.000000e+00 : f32
    %46 = vector.broadcast %cst_8 : f32 to vector<6x128xf32>
    %47 = arith.maximumf %45, %46 : vector<6x128xf32>
    %c1_9 = arith.constant 1 : index
    %c0_10 = arith.constant 0 : index
    %c0_11 = arith.constant 0 : index
    %48 = vector.load %arg1[%c1_9, %c0_10, %c0_11] : memref<7x7x128xf32, #tpu.memory_space<vmem>>, vector<1x7x128xf32>
    %49 = vector.shape_cast %48 : vector<1x7x128xf32> to vector<7x128xf32>
    %c2_12 = arith.constant 2 : index
    %c0_13 = arith.constant 0 : index
    %c0_14 = arith.constant 0 : index
    %50 = vector.load %arg1[%c2_12, %c0_13, %c0_14] : memref<7x7x128xf32, #tpu.memory_space<vmem>>, vector<1x7x128xf32>
    %51 = vector.shape_cast %50 : vector<1x7x128xf32> to vector<7x128xf32>
    %52 = vector.extract_strided_slice %49 {offsets = [0, 0], sizes = [6, 128], strides = [1, 1]} : vector<7x128xf32> to vector<6x128xf32>
    %53 = vector.extract_strided_slice %49 {offsets = [1, 0], sizes = [6, 128], strides = [1, 1]} : vector<7x128xf32> to vector<6x128xf32>
    %54 = vector.extract_strided_slice %51 {offsets = [0, 0], sizes = [6, 128], strides = [1, 1]} : vector<7x128xf32> to vector<6x128xf32>
    %55 = vector.extract_strided_slice %51 {offsets = [1, 0], sizes = [6, 128], strides = [1, 1]} : vector<7x128xf32> to vector<6x128xf32>
    %c0_15 = arith.constant 0 : index
    %56 = memref.load %arg2[%c0_15] : memref<8xf32, #tpu.memory_space<smem>>
    %57 = vector.broadcast %56 : f32 to vector<6x128xf32>
    %58 = arith.mulf %52, %57 : vector<6x128xf32>
    %c1_16 = arith.constant 1 : index
    %59 = memref.load %arg2[%c1_16] : memref<8xf32, #tpu.memory_space<smem>>
    %60 = vector.broadcast %59 : f32 to vector<6x128xf32>
    %61 = arith.mulf %53, %60 : vector<6x128xf32>
    %c2_17 = arith.constant 2 : index
    %62 = memref.load %arg2[%c2_17] : memref<8xf32, #tpu.memory_space<smem>>
    %63 = vector.broadcast %62 : f32 to vector<6x128xf32>
    %64 = arith.mulf %54, %63 : vector<6x128xf32>
    %c3_18 = arith.constant 3 : index
    %65 = memref.load %arg2[%c3_18] : memref<8xf32, #tpu.memory_space<smem>>
    %66 = vector.broadcast %65 : f32 to vector<6x128xf32>
    %67 = arith.mulf %55, %66 : vector<6x128xf32>
    %68 = arith.addf %58, %61 : vector<6x128xf32>
    %69 = arith.addf %64, %67 : vector<6x128xf32>
    %70 = arith.addf %68, %69 : vector<6x128xf32>
    %c0_19 = arith.constant 0 : index
    %71 = memref.load %arg3[%c0_19] : memref<2xf32, #tpu.memory_space<smem>>
    %72 = vector.broadcast %71 : f32 to vector<6x128xf32>
    %73 = arith.addf %70, %72 : vector<6x128xf32>
    %cst_20 = arith.constant 0.000000e+00 : f32
    %74 = vector.broadcast %cst_20 : f32 to vector<6x128xf32>
    %75 = arith.maximumf %73, %74 : vector<6x128xf32>
    %c4_21 = arith.constant 4 : index
    %76 = memref.load %arg2[%c4_21] : memref<8xf32, #tpu.memory_space<smem>>
    %77 = vector.broadcast %76 : f32 to vector<6x128xf32>
    %78 = arith.mulf %52, %77 : vector<6x128xf32>
    %c5_22 = arith.constant 5 : index
    %79 = memref.load %arg2[%c5_22] : memref<8xf32, #tpu.memory_space<smem>>
    %80 = vector.broadcast %79 : f32 to vector<6x128xf32>
    %81 = arith.mulf %53, %80 : vector<6x128xf32>
    %c6_23 = arith.constant 6 : index
    %82 = memref.load %arg2[%c6_23] : memref<8xf32, #tpu.memory_space<smem>>
    %83 = vector.broadcast %82 : f32 to vector<6x128xf32>
    %84 = arith.mulf %54, %83 : vector<6x128xf32>
    %c7_24 = arith.constant 7 : index
    %85 = memref.load %arg2[%c7_24] : memref<8xf32, #tpu.memory_space<smem>>
    %86 = vector.broadcast %85 : f32 to vector<6x128xf32>
    %87 = arith.mulf %55, %86 : vector<6x128xf32>
    %88 = arith.addf %78, %81 : vector<6x128xf32>
    %89 = arith.addf %84, %87 : vector<6x128xf32>
    %90 = arith.addf %88, %89 : vector<6x128xf32>
    %c1_25 = arith.constant 1 : index
    %91 = memref.load %arg3[%c1_25] : memref<2xf32, #tpu.memory_space<smem>>
    %92 = vector.broadcast %91 : f32 to vector<6x128xf32>
    %93 = arith.addf %90, %92 : vector<6x128xf32>
    %cst_26 = arith.constant 0.000000e+00 : f32
    %94 = vector.broadcast %cst_26 : f32 to vector<6x128xf32>
    %95 = arith.maximumf %93, %94 : vector<6x128xf32>
    %96 = arith.maximumf %27, %75 : vector<6x128xf32>
    %97 = vector.extract_strided_slice %96 {offsets = [0, 0], sizes = [1, 128], strides = [1, 1]} : vector<6x128xf32> to vector<1x128xf32>
    %98 = vector.extract_strided_slice %96 {offsets = [1, 0], sizes = [1, 128], strides = [1, 1]} : vector<6x128xf32> to vector<1x128xf32>
    %99 = arith.maximumf %97, %98 : vector<1x128xf32>
    %100 = vector.extract_strided_slice %96 {offsets = [2, 0], sizes = [1, 128], strides = [1, 1]} : vector<6x128xf32> to vector<1x128xf32>
    %101 = vector.extract_strided_slice %96 {offsets = [3, 0], sizes = [1, 128], strides = [1, 1]} : vector<6x128xf32> to vector<1x128xf32>
    %102 = arith.maximumf %100, %101 : vector<1x128xf32>
    %103 = vector.extract_strided_slice %96 {offsets = [4, 0], sizes = [1, 128], strides = [1, 1]} : vector<6x128xf32> to vector<1x128xf32>
    %104 = vector.extract_strided_slice %96 {offsets = [5, 0], sizes = [1, 128], strides = [1, 1]} : vector<6x128xf32> to vector<1x128xf32>
    %105 = arith.maximumf %103, %104 : vector<1x128xf32>
    %106 = arith.maximumf %47, %95 : vector<6x128xf32>
    %107 = vector.extract_strided_slice %106 {offsets = [0, 0], sizes = [1, 128], strides = [1, 1]} : vector<6x128xf32> to vector<1x128xf32>
    %108 = vector.extract_strided_slice %106 {offsets = [1, 0], sizes = [1, 128], strides = [1, 1]} : vector<6x128xf32> to vector<1x128xf32>
    %109 = arith.maximumf %107, %108 : vector<1x128xf32>
    %110 = vector.extract_strided_slice %106 {offsets = [2, 0], sizes = [1, 128], strides = [1, 1]} : vector<6x128xf32> to vector<1x128xf32>
    %111 = vector.extract_strided_slice %106 {offsets = [3, 0], sizes = [1, 128], strides = [1, 1]} : vector<6x128xf32> to vector<1x128xf32>
    %112 = arith.maximumf %110, %111 : vector<1x128xf32>
    %113 = vector.extract_strided_slice %106 {offsets = [4, 0], sizes = [1, 128], strides = [1, 1]} : vector<6x128xf32> to vector<1x128xf32>
    %114 = vector.extract_strided_slice %106 {offsets = [5, 0], sizes = [1, 128], strides = [1, 1]} : vector<6x128xf32> to vector<1x128xf32>
    %115 = arith.maximumf %113, %114 : vector<1x128xf32>
    %c2_27 = arith.constant 2 : index
    %c0_28 = arith.constant 0 : index
    %c0_29 = arith.constant 0 : index
    %116 = vector.load %arg1[%c2_27, %c0_28, %c0_29] : memref<7x7x128xf32, #tpu.memory_space<vmem>>, vector<1x7x128xf32>
    %117 = vector.shape_cast %116 : vector<1x7x128xf32> to vector<7x128xf32>
    %c3_30 = arith.constant 3 : index
    %c0_31 = arith.constant 0 : index
    %c0_32 = arith.constant 0 : index
    %118 = vector.load %arg1[%c3_30, %c0_31, %c0_32] : memref<7x7x128xf32, #tpu.memory_space<vmem>>, vector<1x7x128xf32>
    %119 = vector.shape_cast %118 : vector<1x7x128xf32> to vector<7x128xf32>
    %120 = vector.extract_strided_slice %117 {offsets = [0, 0], sizes = [6, 128], strides = [1, 1]} : vector<7x128xf32> to vector<6x128xf32>
    %121 = vector.extract_strided_slice %117 {offsets = [1, 0], sizes = [6, 128], strides = [1, 1]} : vector<7x128xf32> to vector<6x128xf32>
    %122 = vector.extract_strided_slice %119 {offsets = [0, 0], sizes = [6, 128], strides = [1, 1]} : vector<7x128xf32> to vector<6x128xf32>
    %123 = vector.extract_strided_slice %119 {offsets = [1, 0], sizes = [6, 128], strides = [1, 1]} : vector<7x128xf32> to vector<6x128xf32>
    %c0_33 = arith.constant 0 : index
    %124 = memref.load %arg2[%c0_33] : memref<8xf32, #tpu.memory_space<smem>>
    %125 = vector.broadcast %124 : f32 to vector<6x128xf32>
    %126 = arith.mulf %120, %125 : vector<6x128xf32>
    %c1_34 = arith.constant 1 : index
    %127 = memref.load %arg2[%c1_34] : memref<8xf32, #tpu.memory_space<smem>>
    %128 = vector.broadcast %127 : f32 to vector<6x128xf32>
    %129 = arith.mulf %121, %128 : vector<6x128xf32>
    %c2_35 = arith.constant 2 : index
    %130 = memref.load %arg2[%c2_35] : memref<8xf32, #tpu.memory_space<smem>>
    %131 = vector.broadcast %130 : f32 to vector<6x128xf32>
    %132 = arith.mulf %122, %131 : vector<6x128xf32>
    %c3_36 = arith.constant 3 : index
    %133 = memref.load %arg2[%c3_36] : memref<8xf32, #tpu.memory_space<smem>>
    %134 = vector.broadcast %133 : f32 to vector<6x128xf32>
    %135 = arith.mulf %123, %134 : vector<6x128xf32>
    %136 = arith.addf %126, %129 : vector<6x128xf32>
    %137 = arith.addf %132, %135 : vector<6x128xf32>
    %138 = arith.addf %136, %137 : vector<6x128xf32>
    %c0_37 = arith.constant 0 : index
    %139 = memref.load %arg3[%c0_37] : memref<2xf32, #tpu.memory_space<smem>>
    %140 = vector.broadcast %139 : f32 to vector<6x128xf32>
    %141 = arith.addf %138, %140 : vector<6x128xf32>
    %cst_38 = arith.constant 0.000000e+00 : f32
    %142 = vector.broadcast %cst_38 : f32 to vector<6x128xf32>
    %143 = arith.maximumf %141, %142 : vector<6x128xf32>
    %c4_39 = arith.constant 4 : index
    %144 = memref.load %arg2[%c4_39] : memref<8xf32, #tpu.memory_space<smem>>
    %145 = vector.broadcast %144 : f32 to vector<6x128xf32>
    %146 = arith.mulf %120, %145 : vector<6x128xf32>
    %c5_40 = arith.constant 5 : index
    %147 = memref.load %arg2[%c5_40] : memref<8xf32, #tpu.memory_space<smem>>
    %148 = vector.broadcast %147 : f32 to vector<6x128xf32>
    %149 = arith.mulf %121, %148 : vector<6x128xf32>
    %c6_41 = arith.constant 6 : index
    %150 = memref.load %arg2[%c6_41] : memref<8xf32, #tpu.memory_space<smem>>
    %151 = vector.broadcast %150 : f32 to vector<6x128xf32>
    %152 = arith.mulf %122, %151 : vector<6x128xf32>
    %c7_42 = arith.constant 7 : index
    %153 = memref.load %arg2[%c7_42] : memref<8xf32, #tpu.memory_space<smem>>
    %154 = vector.broadcast %153 : f32 to vector<6x128xf32>
    %155 = arith.mulf %123, %154 : vector<6x128xf32>
    %156 = arith.addf %146, %149 : vector<6x128xf32>
    %157 = arith.addf %152, %155 : vector<6x128xf32>
    %158 = arith.addf %156, %157 : vector<6x128xf32>
    %c1_43 = arith.constant 1 : index
    %159 = memref.load %arg3[%c1_43] : memref<2xf32, #tpu.memory_space<smem>>
    %160 = vector.broadcast %159 : f32 to vector<6x128xf32>
    %161 = arith.addf %158, %160 : vector<6x128xf32>
    %cst_44 = arith.constant 0.000000e+00 : f32
    %162 = vector.broadcast %cst_44 : f32 to vector<6x128xf32>
    %163 = arith.maximumf %161, %162 : vector<6x128xf32>
    %c3_45 = arith.constant 3 : index
    %c0_46 = arith.constant 0 : index
    %c0_47 = arith.constant 0 : index
    %164 = vector.load %arg1[%c3_45, %c0_46, %c0_47] : memref<7x7x128xf32, #tpu.memory_space<vmem>>, vector<1x7x128xf32>
    %165 = vector.shape_cast %164 : vector<1x7x128xf32> to vector<7x128xf32>
    %c4_48 = arith.constant 4 : index
    %c0_49 = arith.constant 0 : index
    %c0_50 = arith.constant 0 : index
    %166 = vector.load %arg1[%c4_48, %c0_49, %c0_50] : memref<7x7x128xf32, #tpu.memory_space<vmem>>, vector<1x7x128xf32>
    %167 = vector.shape_cast %166 : vector<1x7x128xf32> to vector<7x128xf32>
    %168 = vector.extract_strided_slice %165 {offsets = [0, 0], sizes = [6, 128], strides = [1, 1]} : vector<7x128xf32> to vector<6x128xf32>
    %169 = vector.extract_strided_slice %165 {offsets = [1, 0], sizes = [6, 128], strides = [1, 1]} : vector<7x128xf32> to vector<6x128xf32>
    %170 = vector.extract_strided_slice %167 {offsets = [0, 0], sizes = [6, 128], strides = [1, 1]} : vector<7x128xf32> to vector<6x128xf32>
    %171 = vector.extract_strided_slice %167 {offsets = [1, 0], sizes = [6, 128], strides = [1, 1]} : vector<7x128xf32> to vector<6x128xf32>
    %c0_51 = arith.constant 0 : index
    %172 = memref.load %arg2[%c0_51] : memref<8xf32, #tpu.memory_space<smem>>
    %173 = vector.broadcast %172 : f32 to vector<6x128xf32>
    %174 = arith.mulf %168, %173 : vector<6x128xf32>
    %c1_52 = arith.constant 1 : index
    %175 = memref.load %arg2[%c1_52] : memref<8xf32, #tpu.memory_space<smem>>
    %176 = vector.broadcast %175 : f32 to vector<6x128xf32>
    %177 = arith.mulf %169, %176 : vector<6x128xf32>
    %c2_53 = arith.constant 2 : index
    %178 = memref.load %arg2[%c2_53] : memref<8xf32, #tpu.memory_space<smem>>
    %179 = vector.broadcast %178 : f32 to vector<6x128xf32>
    %180 = arith.mulf %170, %179 : vector<6x128xf32>
    %c3_54 = arith.constant 3 : index
    %181 = memref.load %arg2[%c3_54] : memref<8xf32, #tpu.memory_space<smem>>
    %182 = vector.broadcast %181 : f32 to vector<6x128xf32>
    %183 = arith.mulf %171, %182 : vector<6x128xf32>
    %184 = arith.addf %174, %177 : vector<6x128xf32>
    %185 = arith.addf %180, %183 : vector<6x128xf32>
    %186 = arith.addf %184, %185 : vector<6x128xf32>
    %c0_55 = arith.constant 0 : index
    %187 = memref.load %arg3[%c0_55] : memref<2xf32, #tpu.memory_space<smem>>
    %188 = vector.broadcast %187 : f32 to vector<6x128xf32>
    %189 = arith.addf %186, %188 : vector<6x128xf32>
    %cst_56 = arith.constant 0.000000e+00 : f32
    %190 = vector.broadcast %cst_56 : f32 to vector<6x128xf32>
    %191 = arith.maximumf %189, %190 : vector<6x128xf32>
    %c4_57 = arith.constant 4 : index
    %192 = memref.load %arg2[%c4_57] : memref<8xf32, #tpu.memory_space<smem>>
    %193 = vector.broadcast %192 : f32 to vector<6x128xf32>
    %194 = arith.mulf %168, %193 : vector<6x128xf32>
    %c5_58 = arith.constant 5 : index
    %195 = memref.load %arg2[%c5_58] : memref<8xf32, #tpu.memory_space<smem>>
    %196 = vector.broadcast %195 : f32 to vector<6x128xf32>
    %197 = arith.mulf %169, %196 : vector<6x128xf32>
    %c6_59 = arith.constant 6 : index
    %198 = memref.load %arg2[%c6_59] : memref<8xf32, #tpu.memory_space<smem>>
    %199 = vector.broadcast %198 : f32 to vector<6x128xf32>
    %200 = arith.mulf %170, %199 : vector<6x128xf32>
    %c7_60 = arith.constant 7 : index
    %201 = memref.load %arg2[%c7_60] : memref<8xf32, #tpu.memory_space<smem>>
    %202 = vector.broadcast %201 : f32 to vector<6x128xf32>
    %203 = arith.mulf %171, %202 : vector<6x128xf32>
    %204 = arith.addf %194, %197 : vector<6x128xf32>
    %205 = arith.addf %200, %203 : vector<6x128xf32>
    %206 = arith.addf %204, %205 : vector<6x128xf32>
    %c1_61 = arith.constant 1 : index
    %207 = memref.load %arg3[%c1_61] : memref<2xf32, #tpu.memory_space<smem>>
    %208 = vector.broadcast %207 : f32 to vector<6x128xf32>
    %209 = arith.addf %206, %208 : vector<6x128xf32>
    %cst_62 = arith.constant 0.000000e+00 : f32
    %210 = vector.broadcast %cst_62 : f32 to vector<6x128xf32>
    %211 = arith.maximumf %209, %210 : vector<6x128xf32>
    %212 = arith.maximumf %143, %191 : vector<6x128xf32>
    %213 = vector.extract_strided_slice %212 {offsets = [0, 0], sizes = [1, 128], strides = [1, 1]} : vector<6x128xf32> to vector<1x128xf32>
    %214 = vector.extract_strided_slice %212 {offsets = [1, 0], sizes = [1, 128], strides = [1, 1]} : vector<6x128xf32> to vector<1x128xf32>
    %215 = arith.maximumf %213, %214 : vector<1x128xf32>
    %216 = vector.extract_strided_slice %212 {offsets = [2, 0], sizes = [1, 128], strides = [1, 1]} : vector<6x128xf32> to vector<1x128xf32>
    %217 = vector.extract_strided_slice %212 {offsets = [3, 0], sizes = [1, 128], strides = [1, 1]} : vector<6x128xf32> to vector<1x128xf32>
    %218 = arith.maximumf %216, %217 : vector<1x128xf32>
    %219 = vector.extract_strided_slice %212 {offsets = [4, 0], sizes = [1, 128], strides = [1, 1]} : vector<6x128xf32> to vector<1x128xf32>
    %220 = vector.extract_strided_slice %212 {offsets = [5, 0], sizes = [1, 128], strides = [1, 1]} : vector<6x128xf32> to vector<1x128xf32>
    %221 = arith.maximumf %219, %220 : vector<1x128xf32>
    %222 = arith.maximumf %163, %211 : vector<6x128xf32>
    %223 = vector.extract_strided_slice %222 {offsets = [0, 0], sizes = [1, 128], strides = [1, 1]} : vector<6x128xf32> to vector<1x128xf32>
    %224 = vector.extract_strided_slice %222 {offsets = [1, 0], sizes = [1, 128], strides = [1, 1]} : vector<6x128xf32> to vector<1x128xf32>
    %225 = arith.maximumf %223, %224 : vector<1x128xf32>
    %226 = vector.extract_strided_slice %222 {offsets = [2, 0], sizes = [1, 128], strides = [1, 1]} : vector<6x128xf32> to vector<1x128xf32>
    %227 = vector.extract_strided_slice %222 {offsets = [3, 0], sizes = [1, 128], strides = [1, 1]} : vector<6x128xf32> to vector<1x128xf32>
    %228 = arith.maximumf %226, %227 : vector<1x128xf32>
    %229 = vector.extract_strided_slice %222 {offsets = [4, 0], sizes = [1, 128], strides = [1, 1]} : vector<6x128xf32> to vector<1x128xf32>
    %230 = vector.extract_strided_slice %222 {offsets = [5, 0], sizes = [1, 128], strides = [1, 1]} : vector<6x128xf32> to vector<1x128xf32>
    %231 = arith.maximumf %229, %230 : vector<1x128xf32>
    %c4_63 = arith.constant 4 : index
    %c0_64 = arith.constant 0 : index
    %c0_65 = arith.constant 0 : index
    %232 = vector.load %arg1[%c4_63, %c0_64, %c0_65] : memref<7x7x128xf32, #tpu.memory_space<vmem>>, vector<1x7x128xf32>
    %233 = vector.shape_cast %232 : vector<1x7x128xf32> to vector<7x128xf32>
    %c5_66 = arith.constant 5 : index
    %c0_67 = arith.constant 0 : index
    %c0_68 = arith.constant 0 : index
    %234 = vector.load %arg1[%c5_66, %c0_67, %c0_68] : memref<7x7x128xf32, #tpu.memory_space<vmem>>, vector<1x7x128xf32>
    %235 = vector.shape_cast %234 : vector<1x7x128xf32> to vector<7x128xf32>
    %236 = vector.extract_strided_slice %233 {offsets = [0, 0], sizes = [6, 128], strides = [1, 1]} : vector<7x128xf32> to vector<6x128xf32>
    %237 = vector.extract_strided_slice %233 {offsets = [1, 0], sizes = [6, 128], strides = [1, 1]} : vector<7x128xf32> to vector<6x128xf32>
    %238 = vector.extract_strided_slice %235 {offsets = [0, 0], sizes = [6, 128], strides = [1, 1]} : vector<7x128xf32> to vector<6x128xf32>
    %239 = vector.extract_strided_slice %235 {offsets = [1, 0], sizes = [6, 128], strides = [1, 1]} : vector<7x128xf32> to vector<6x128xf32>
    %c0_69 = arith.constant 0 : index
    %240 = memref.load %arg2[%c0_69] : memref<8xf32, #tpu.memory_space<smem>>
    %241 = vector.broadcast %240 : f32 to vector<6x128xf32>
    %242 = arith.mulf %236, %241 : vector<6x128xf32>
    %c1_70 = arith.constant 1 : index
    %243 = memref.load %arg2[%c1_70] : memref<8xf32, #tpu.memory_space<smem>>
    %244 = vector.broadcast %243 : f32 to vector<6x128xf32>
    %245 = arith.mulf %237, %244 : vector<6x128xf32>
    %c2_71 = arith.constant 2 : index
    %246 = memref.load %arg2[%c2_71] : memref<8xf32, #tpu.memory_space<smem>>
    %247 = vector.broadcast %246 : f32 to vector<6x128xf32>
    %248 = arith.mulf %238, %247 : vector<6x128xf32>
    %c3_72 = arith.constant 3 : index
    %249 = memref.load %arg2[%c3_72] : memref<8xf32, #tpu.memory_space<smem>>
    %250 = vector.broadcast %249 : f32 to vector<6x128xf32>
    %251 = arith.mulf %239, %250 : vector<6x128xf32>
    %252 = arith.addf %242, %245 : vector<6x128xf32>
    %253 = arith.addf %248, %251 : vector<6x128xf32>
    %254 = arith.addf %252, %253 : vector<6x128xf32>
    %c0_73 = arith.constant 0 : index
    %255 = memref.load %arg3[%c0_73] : memref<2xf32, #tpu.memory_space<smem>>
    %256 = vector.broadcast %255 : f32 to vector<6x128xf32>
    %257 = arith.addf %254, %256 : vector<6x128xf32>
    %cst_74 = arith.constant 0.000000e+00 : f32
    %258 = vector.broadcast %cst_74 : f32 to vector<6x128xf32>
    %259 = arith.maximumf %257, %258 : vector<6x128xf32>
    %c4_75 = arith.constant 4 : index
    %260 = memref.load %arg2[%c4_75] : memref<8xf32, #tpu.memory_space<smem>>
    %261 = vector.broadcast %260 : f32 to vector<6x128xf32>
    %262 = arith.mulf %236, %261 : vector<6x128xf32>
    %c5_76 = arith.constant 5 : index
    %263 = memref.load %arg2[%c5_76] : memref<8xf32, #tpu.memory_space<smem>>
    %264 = vector.broadcast %263 : f32 to vector<6x128xf32>
    %265 = arith.mulf %237, %264 : vector<6x128xf32>
    %c6_77 = arith.constant 6 : index
    %266 = memref.load %arg2[%c6_77] : memref<8xf32, #tpu.memory_space<smem>>
    %267 = vector.broadcast %266 : f32 to vector<6x128xf32>
    %268 = arith.mulf %238, %267 : vector<6x128xf32>
    %c7_78 = arith.constant 7 : index
    %269 = memref.load %arg2[%c7_78] : memref<8xf32, #tpu.memory_space<smem>>
    %270 = vector.broadcast %269 : f32 to vector<6x128xf32>
    %271 = arith.mulf %239, %270 : vector<6x128xf32>
    %272 = arith.addf %262, %265 : vector<6x128xf32>
    %273 = arith.addf %268, %271 : vector<6x128xf32>
    %274 = arith.addf %272, %273 : vector<6x128xf32>
    %c1_79 = arith.constant 1 : index
    %275 = memref.load %arg3[%c1_79] : memref<2xf32, #tpu.memory_space<smem>>
    %276 = vector.broadcast %275 : f32 to vector<6x128xf32>
    %277 = arith.addf %274, %276 : vector<6x128xf32>
    %cst_80 = arith.constant 0.000000e+00 : f32
    %278 = vector.broadcast %cst_80 : f32 to vector<6x128xf32>
    %279 = arith.maximumf %277, %278 : vector<6x128xf32>
    %c5_81 = arith.constant 5 : index
    %c0_82 = arith.constant 0 : index
    %c0_83 = arith.constant 0 : index
    %280 = vector.load %arg1[%c5_81, %c0_82, %c0_83] : memref<7x7x128xf32, #tpu.memory_space<vmem>>, vector<1x7x128xf32>
    %281 = vector.shape_cast %280 : vector<1x7x128xf32> to vector<7x128xf32>
    %c6_84 = arith.constant 6 : index
    %c0_85 = arith.constant 0 : index
    %c0_86 = arith.constant 0 : index
    %282 = vector.load %arg1[%c6_84, %c0_85, %c0_86] : memref<7x7x128xf32, #tpu.memory_space<vmem>>, vector<1x7x128xf32>
    %283 = vector.shape_cast %282 : vector<1x7x128xf32> to vector<7x128xf32>
    %284 = vector.extract_strided_slice %281 {offsets = [0, 0], sizes = [6, 128], strides = [1, 1]} : vector<7x128xf32> to vector<6x128xf32>
    %285 = vector.extract_strided_slice %281 {offsets = [1, 0], sizes = [6, 128], strides = [1, 1]} : vector<7x128xf32> to vector<6x128xf32>
    %286 = vector.extract_strided_slice %283 {offsets = [0, 0], sizes = [6, 128], strides = [1, 1]} : vector<7x128xf32> to vector<6x128xf32>
    %287 = vector.extract_strided_slice %283 {offsets = [1, 0], sizes = [6, 128], strides = [1, 1]} : vector<7x128xf32> to vector<6x128xf32>
    %c0_87 = arith.constant 0 : index
    %288 = memref.load %arg2[%c0_87] : memref<8xf32, #tpu.memory_space<smem>>
    %289 = vector.broadcast %288 : f32 to vector<6x128xf32>
    %290 = arith.mulf %284, %289 : vector<6x128xf32>
    %c1_88 = arith.constant 1 : index
    %291 = memref.load %arg2[%c1_88] : memref<8xf32, #tpu.memory_space<smem>>
    %292 = vector.broadcast %291 : f32 to vector<6x128xf32>
    %293 = arith.mulf %285, %292 : vector<6x128xf32>
    %c2_89 = arith.constant 2 : index
    %294 = memref.load %arg2[%c2_89] : memref<8xf32, #tpu.memory_space<smem>>
    %295 = vector.broadcast %294 : f32 to vector<6x128xf32>
    %296 = arith.mulf %286, %295 : vector<6x128xf32>
    %c3_90 = arith.constant 3 : index
    %297 = memref.load %arg2[%c3_90] : memref<8xf32, #tpu.memory_space<smem>>
    %298 = vector.broadcast %297 : f32 to vector<6x128xf32>
    %299 = arith.mulf %287, %298 : vector<6x128xf32>
    %300 = arith.addf %290, %293 : vector<6x128xf32>
    %301 = arith.addf %296, %299 : vector<6x128xf32>
    %302 = arith.addf %300, %301 : vector<6x128xf32>
    %c0_91 = arith.constant 0 : index
    %303 = memref.load %arg3[%c0_91] : memref<2xf32, #tpu.memory_space<smem>>
    %304 = vector.broadcast %303 : f32 to vector<6x128xf32>
    %305 = arith.addf %302, %304 : vector<6x128xf32>
    %cst_92 = arith.constant 0.000000e+00 : f32
    %306 = vector.broadcast %cst_92 : f32 to vector<6x128xf32>
    %307 = arith.maximumf %305, %306 : vector<6x128xf32>
    %c4_93 = arith.constant 4 : index
    %308 = memref.load %arg2[%c4_93] : memref<8xf32, #tpu.memory_space<smem>>
    %309 = vector.broadcast %308 : f32 to vector<6x128xf32>
    %310 = arith.mulf %284, %309 : vector<6x128xf32>
    %c5_94 = arith.constant 5 : index
    %311 = memref.load %arg2[%c5_94] : memref<8xf32, #tpu.memory_space<smem>>
    %312 = vector.broadcast %311 : f32 to vector<6x128xf32>
    %313 = arith.mulf %285, %312 : vector<6x128xf32>
    %c6_95 = arith.constant 6 : index
    %314 = memref.load %arg2[%c6_95] : memref<8xf32, #tpu.memory_space<smem>>
    %315 = vector.broadcast %314 : f32 to vector<6x128xf32>
    %316 = arith.mulf %286, %315 : vector<6x128xf32>
    %c7_96 = arith.constant 7 : index
    %317 = memref.load %arg2[%c7_96] : memref<8xf32, #tpu.memory_space<smem>>
    %318 = vector.broadcast %317 : f32 to vector<6x128xf32>
    %319 = arith.mulf %287, %318 : vector<6x128xf32>
    %320 = arith.addf %310, %313 : vector<6x128xf32>
    %321 = arith.addf %316, %319 : vector<6x128xf32>
    %322 = arith.addf %320, %321 : vector<6x128xf32>
    %c1_97 = arith.constant 1 : index
    %323 = memref.load %arg3[%c1_97] : memref<2xf32, #tpu.memory_space<smem>>
    %324 = vector.broadcast %323 : f32 to vector<6x128xf32>
    %325 = arith.addf %322, %324 : vector<6x128xf32>
    %cst_98 = arith.constant 0.000000e+00 : f32
    %326 = vector.broadcast %cst_98 : f32 to vector<6x128xf32>
    %327 = arith.maximumf %325, %326 : vector<6x128xf32>
    %328 = arith.maximumf %259, %307 : vector<6x128xf32>
    %329 = vector.extract_strided_slice %328 {offsets = [0, 0], sizes = [1, 128], strides = [1, 1]} : vector<6x128xf32> to vector<1x128xf32>
    %330 = vector.extract_strided_slice %328 {offsets = [1, 0], sizes = [1, 128], strides = [1, 1]} : vector<6x128xf32> to vector<1x128xf32>
    %331 = arith.maximumf %329, %330 : vector<1x128xf32>
    %332 = vector.extract_strided_slice %328 {offsets = [2, 0], sizes = [1, 128], strides = [1, 1]} : vector<6x128xf32> to vector<1x128xf32>
    %333 = vector.extract_strided_slice %328 {offsets = [3, 0], sizes = [1, 128], strides = [1, 1]} : vector<6x128xf32> to vector<1x128xf32>
    %334 = arith.maximumf %332, %333 : vector<1x128xf32>
    %335 = vector.extract_strided_slice %328 {offsets = [4, 0], sizes = [1, 128], strides = [1, 1]} : vector<6x128xf32> to vector<1x128xf32>
    %336 = vector.extract_strided_slice %328 {offsets = [5, 0], sizes = [1, 128], strides = [1, 1]} : vector<6x128xf32> to vector<1x128xf32>
    %337 = arith.maximumf %335, %336 : vector<1x128xf32>
    %338 = arith.maximumf %279, %327 : vector<6x128xf32>
    %339 = vector.extract_strided_slice %338 {offsets = [0, 0], sizes = [1, 128], strides = [1, 1]} : vector<6x128xf32> to vector<1x128xf32>
    %340 = vector.extract_strided_slice %338 {offsets = [1, 0], sizes = [1, 128], strides = [1, 1]} : vector<6x128xf32> to vector<1x128xf32>
    %341 = arith.maximumf %339, %340 : vector<1x128xf32>
    %342 = vector.extract_strided_slice %338 {offsets = [2, 0], sizes = [1, 128], strides = [1, 1]} : vector<6x128xf32> to vector<1x128xf32>
    %343 = vector.extract_strided_slice %338 {offsets = [3, 0], sizes = [1, 128], strides = [1, 1]} : vector<6x128xf32> to vector<1x128xf32>
    %344 = arith.maximumf %342, %343 : vector<1x128xf32>
    %345 = vector.extract_strided_slice %338 {offsets = [4, 0], sizes = [1, 128], strides = [1, 1]} : vector<6x128xf32> to vector<1x128xf32>
    %346 = vector.extract_strided_slice %338 {offsets = [5, 0], sizes = [1, 128], strides = [1, 1]} : vector<6x128xf32> to vector<1x128xf32>
    %347 = arith.maximumf %345, %346 : vector<1x128xf32>
    %c0_99 = arith.constant 0 : index
    %348 = memref.load %arg4[%c0_99] : memref<16xf32, #tpu.memory_space<smem>>
    %349 = vector.broadcast %348 : f32 to vector<1x128xf32>
    %350 = arith.mulf %99, %349 : vector<1x128xf32>
    %c1_100 = arith.constant 1 : index
    %351 = memref.load %arg4[%c1_100] : memref<16xf32, #tpu.memory_space<smem>>
    %352 = vector.broadcast %351 : f32 to vector<1x128xf32>
    %353 = arith.mulf %102, %352 : vector<1x128xf32>
    %c2_101 = arith.constant 2 : index
    %354 = memref.load %arg4[%c2_101] : memref<16xf32, #tpu.memory_space<smem>>
    %355 = vector.broadcast %354 : f32 to vector<1x128xf32>
    %356 = arith.mulf %215, %355 : vector<1x128xf32>
    %c3_102 = arith.constant 3 : index
    %357 = memref.load %arg4[%c3_102] : memref<16xf32, #tpu.memory_space<smem>>
    %358 = vector.broadcast %357 : f32 to vector<1x128xf32>
    %359 = arith.mulf %218, %358 : vector<1x128xf32>
    %c4_103 = arith.constant 4 : index
    %360 = memref.load %arg4[%c4_103] : memref<16xf32, #tpu.memory_space<smem>>
    %361 = vector.broadcast %360 : f32 to vector<1x128xf32>
    %362 = arith.mulf %109, %361 : vector<1x128xf32>
    %c5_104 = arith.constant 5 : index
    %363 = memref.load %arg4[%c5_104] : memref<16xf32, #tpu.memory_space<smem>>
    %364 = vector.broadcast %363 : f32 to vector<1x128xf32>
    %365 = arith.mulf %112, %364 : vector<1x128xf32>
    %c6_105 = arith.constant 6 : index
    %366 = memref.load %arg4[%c6_105] : memref<16xf32, #tpu.memory_space<smem>>
    %367 = vector.broadcast %366 : f32 to vector<1x128xf32>
    %368 = arith.mulf %225, %367 : vector<1x128xf32>
    %c7_106 = arith.constant 7 : index
    %369 = memref.load %arg4[%c7_106] : memref<16xf32, #tpu.memory_space<smem>>
    %370 = vector.broadcast %369 : f32 to vector<1x128xf32>
    %371 = arith.mulf %228, %370 : vector<1x128xf32>
    %372 = arith.addf %350, %353 : vector<1x128xf32>
    %373 = arith.addf %356, %359 : vector<1x128xf32>
    %374 = arith.addf %362, %365 : vector<1x128xf32>
    %375 = arith.addf %368, %371 : vector<1x128xf32>
    %376 = arith.addf %372, %373 : vector<1x128xf32>
    %377 = arith.addf %374, %375 : vector<1x128xf32>
    %378 = arith.addf %376, %377 : vector<1x128xf32>
    %c0_107 = arith.constant 0 : index
    %379 = memref.load %arg5[%c0_107] : memref<2xf32, #tpu.memory_space<smem>>
    %380 = vector.broadcast %379 : f32 to vector<1x128xf32>
    %381 = arith.addf %378, %380 : vector<1x128xf32>
    %cst_108 = arith.constant 0.000000e+00 : f32
    %382 = vector.broadcast %cst_108 : f32 to vector<1x128xf32>
    %383 = arith.maximumf %381, %382 : vector<1x128xf32>
    %c0_109 = arith.constant 0 : index
    %384 = memref.load %arg4[%c0_109] : memref<16xf32, #tpu.memory_space<smem>>
    %385 = vector.broadcast %384 : f32 to vector<1x128xf32>
    %386 = arith.mulf %102, %385 : vector<1x128xf32>
    %c1_110 = arith.constant 1 : index
    %387 = memref.load %arg4[%c1_110] : memref<16xf32, #tpu.memory_space<smem>>
    %388 = vector.broadcast %387 : f32 to vector<1x128xf32>
    %389 = arith.mulf %105, %388 : vector<1x128xf32>
    %c2_111 = arith.constant 2 : index
    %390 = memref.load %arg4[%c2_111] : memref<16xf32, #tpu.memory_space<smem>>
    %391 = vector.broadcast %390 : f32 to vector<1x128xf32>
    %392 = arith.mulf %218, %391 : vector<1x128xf32>
    %c3_112 = arith.constant 3 : index
    %393 = memref.load %arg4[%c3_112] : memref<16xf32, #tpu.memory_space<smem>>
    %394 = vector.broadcast %393 : f32 to vector<1x128xf32>
    %395 = arith.mulf %221, %394 : vector<1x128xf32>
    %c4_113 = arith.constant 4 : index
    %396 = memref.load %arg4[%c4_113] : memref<16xf32, #tpu.memory_space<smem>>
    %397 = vector.broadcast %396 : f32 to vector<1x128xf32>
    %398 = arith.mulf %112, %397 : vector<1x128xf32>
    %c5_114 = arith.constant 5 : index
    %399 = memref.load %arg4[%c5_114] : memref<16xf32, #tpu.memory_space<smem>>
    %400 = vector.broadcast %399 : f32 to vector<1x128xf32>
    %401 = arith.mulf %115, %400 : vector<1x128xf32>
    %c6_115 = arith.constant 6 : index
    %402 = memref.load %arg4[%c6_115] : memref<16xf32, #tpu.memory_space<smem>>
    %403 = vector.broadcast %402 : f32 to vector<1x128xf32>
    %404 = arith.mulf %228, %403 : vector<1x128xf32>
    %c7_116 = arith.constant 7 : index
    %405 = memref.load %arg4[%c7_116] : memref<16xf32, #tpu.memory_space<smem>>
    %406 = vector.broadcast %405 : f32 to vector<1x128xf32>
    %407 = arith.mulf %231, %406 : vector<1x128xf32>
    %408 = arith.addf %386, %389 : vector<1x128xf32>
    %409 = arith.addf %392, %395 : vector<1x128xf32>
    %410 = arith.addf %398, %401 : vector<1x128xf32>
    %411 = arith.addf %404, %407 : vector<1x128xf32>
    %412 = arith.addf %408, %409 : vector<1x128xf32>
    %413 = arith.addf %410, %411 : vector<1x128xf32>
    %414 = arith.addf %412, %413 : vector<1x128xf32>
    %c0_117 = arith.constant 0 : index
    %415 = memref.load %arg5[%c0_117] : memref<2xf32, #tpu.memory_space<smem>>
    %416 = vector.broadcast %415 : f32 to vector<1x128xf32>
    %417 = arith.addf %414, %416 : vector<1x128xf32>
    %cst_118 = arith.constant 0.000000e+00 : f32
    %418 = vector.broadcast %cst_118 : f32 to vector<1x128xf32>
    %419 = arith.maximumf %417, %418 : vector<1x128xf32>
    %c0_119 = arith.constant 0 : index
    %420 = memref.load %arg4[%c0_119] : memref<16xf32, #tpu.memory_space<smem>>
    %421 = vector.broadcast %420 : f32 to vector<1x128xf32>
    %422 = arith.mulf %215, %421 : vector<1x128xf32>
    %c1_120 = arith.constant 1 : index
    %423 = memref.load %arg4[%c1_120] : memref<16xf32, #tpu.memory_space<smem>>
    %424 = vector.broadcast %423 : f32 to vector<1x128xf32>
    %425 = arith.mulf %218, %424 : vector<1x128xf32>
    %c2_121 = arith.constant 2 : index
    %426 = memref.load %arg4[%c2_121] : memref<16xf32, #tpu.memory_space<smem>>
    %427 = vector.broadcast %426 : f32 to vector<1x128xf32>
    %428 = arith.mulf %331, %427 : vector<1x128xf32>
    %c3_122 = arith.constant 3 : index
    %429 = memref.load %arg4[%c3_122] : memref<16xf32, #tpu.memory_space<smem>>
    %430 = vector.broadcast %429 : f32 to vector<1x128xf32>
    %431 = arith.mulf %334, %430 : vector<1x128xf32>
    %c4_123 = arith.constant 4 : index
    %432 = memref.load %arg4[%c4_123] : memref<16xf32, #tpu.memory_space<smem>>
    %433 = vector.broadcast %432 : f32 to vector<1x128xf32>
    %434 = arith.mulf %225, %433 : vector<1x128xf32>
    %c5_124 = arith.constant 5 : index
    %435 = memref.load %arg4[%c5_124] : memref<16xf32, #tpu.memory_space<smem>>
    %436 = vector.broadcast %435 : f32 to vector<1x128xf32>
    %437 = arith.mulf %228, %436 : vector<1x128xf32>
    %c6_125 = arith.constant 6 : index
    %438 = memref.load %arg4[%c6_125] : memref<16xf32, #tpu.memory_space<smem>>
    %439 = vector.broadcast %438 : f32 to vector<1x128xf32>
    %440 = arith.mulf %341, %439 : vector<1x128xf32>
    %c7_126 = arith.constant 7 : index
    %441 = memref.load %arg4[%c7_126] : memref<16xf32, #tpu.memory_space<smem>>
    %442 = vector.broadcast %441 : f32 to vector<1x128xf32>
    %443 = arith.mulf %344, %442 : vector<1x128xf32>
    %444 = arith.addf %422, %425 : vector<1x128xf32>
    %445 = arith.addf %428, %431 : vector<1x128xf32>
    %446 = arith.addf %434, %437 : vector<1x128xf32>
    %447 = arith.addf %440, %443 : vector<1x128xf32>
    %448 = arith.addf %444, %445 : vector<1x128xf32>
    %449 = arith.addf %446, %447 : vector<1x128xf32>
    %450 = arith.addf %448, %449 : vector<1x128xf32>
    %c0_127 = arith.constant 0 : index
    %451 = memref.load %arg5[%c0_127] : memref<2xf32, #tpu.memory_space<smem>>
    %452 = vector.broadcast %451 : f32 to vector<1x128xf32>
    %453 = arith.addf %450, %452 : vector<1x128xf32>
    %cst_128 = arith.constant 0.000000e+00 : f32
    %454 = vector.broadcast %cst_128 : f32 to vector<1x128xf32>
    %455 = arith.maximumf %453, %454 : vector<1x128xf32>
    %c0_129 = arith.constant 0 : index
    %456 = memref.load %arg4[%c0_129] : memref<16xf32, #tpu.memory_space<smem>>
    %457 = vector.broadcast %456 : f32 to vector<1x128xf32>
    %458 = arith.mulf %218, %457 : vector<1x128xf32>
    %c1_130 = arith.constant 1 : index
    %459 = memref.load %arg4[%c1_130] : memref<16xf32, #tpu.memory_space<smem>>
    %460 = vector.broadcast %459 : f32 to vector<1x128xf32>
    %461 = arith.mulf %221, %460 : vector<1x128xf32>
    %c2_131 = arith.constant 2 : index
    %462 = memref.load %arg4[%c2_131] : memref<16xf32, #tpu.memory_space<smem>>
    %463 = vector.broadcast %462 : f32 to vector<1x128xf32>
    %464 = arith.mulf %334, %463 : vector<1x128xf32>
    %c3_132 = arith.constant 3 : index
    %465 = memref.load %arg4[%c3_132] : memref<16xf32, #tpu.memory_space<smem>>
    %466 = vector.broadcast %465 : f32 to vector<1x128xf32>
    %467 = arith.mulf %337, %466 : vector<1x128xf32>
    %c4_133 = arith.constant 4 : index
    %468 = memref.load %arg4[%c4_133] : memref<16xf32, #tpu.memory_space<smem>>
    %469 = vector.broadcast %468 : f32 to vector<1x128xf32>
    %470 = arith.mulf %228, %469 : vector<1x128xf32>
    %c5_134 = arith.constant 5 : index
    %471 = memref.load %arg4[%c5_134] : memref<16xf32, #tpu.memory_space<smem>>
    %472 = vector.broadcast %471 : f32 to vector<1x128xf32>
    %473 = arith.mulf %231, %472 : vector<1x128xf32>
    %c6_135 = arith.constant 6 : index
    %474 = memref.load %arg4[%c6_135] : memref<16xf32, #tpu.memory_space<smem>>
    %475 = vector.broadcast %474 : f32 to vector<1x128xf32>
    %476 = arith.mulf %344, %475 : vector<1x128xf32>
    %c7_136 = arith.constant 7 : index
    %477 = memref.load %arg4[%c7_136] : memref<16xf32, #tpu.memory_space<smem>>
    %478 = vector.broadcast %477 : f32 to vector<1x128xf32>
    %479 = arith.mulf %347, %478 : vector<1x128xf32>
    %480 = arith.addf %458, %461 : vector<1x128xf32>
    %481 = arith.addf %464, %467 : vector<1x128xf32>
    %482 = arith.addf %470, %473 : vector<1x128xf32>
    %483 = arith.addf %476, %479 : vector<1x128xf32>
    %484 = arith.addf %480, %481 : vector<1x128xf32>
    %485 = arith.addf %482, %483 : vector<1x128xf32>
    %486 = arith.addf %484, %485 : vector<1x128xf32>
    %c0_137 = arith.constant 0 : index
    %487 = memref.load %arg5[%c0_137] : memref<2xf32, #tpu.memory_space<smem>>
    %488 = vector.broadcast %487 : f32 to vector<1x128xf32>
    %489 = arith.addf %486, %488 : vector<1x128xf32>
    %cst_138 = arith.constant 0.000000e+00 : f32
    %490 = vector.broadcast %cst_138 : f32 to vector<1x128xf32>
    %491 = arith.maximumf %489, %490 : vector<1x128xf32>
    %c8 = arith.constant 8 : index
    %492 = memref.load %arg4[%c8] : memref<16xf32, #tpu.memory_space<smem>>
    %493 = vector.broadcast %492 : f32 to vector<1x128xf32>
    %494 = arith.mulf %99, %493 : vector<1x128xf32>
    %c9 = arith.constant 9 : index
    %495 = memref.load %arg4[%c9] : memref<16xf32, #tpu.memory_space<smem>>
    %496 = vector.broadcast %495 : f32 to vector<1x128xf32>
    %497 = arith.mulf %102, %496 : vector<1x128xf32>
    %c10 = arith.constant 10 : index
    %498 = memref.load %arg4[%c10] : memref<16xf32, #tpu.memory_space<smem>>
    %499 = vector.broadcast %498 : f32 to vector<1x128xf32>
    %500 = arith.mulf %215, %499 : vector<1x128xf32>
    %c11 = arith.constant 11 : index
    %501 = memref.load %arg4[%c11] : memref<16xf32, #tpu.memory_space<smem>>
    %502 = vector.broadcast %501 : f32 to vector<1x128xf32>
    %503 = arith.mulf %218, %502 : vector<1x128xf32>
    %c12 = arith.constant 12 : index
    %504 = memref.load %arg4[%c12] : memref<16xf32, #tpu.memory_space<smem>>
    %505 = vector.broadcast %504 : f32 to vector<1x128xf32>
    %506 = arith.mulf %109, %505 : vector<1x128xf32>
    %c13 = arith.constant 13 : index
    %507 = memref.load %arg4[%c13] : memref<16xf32, #tpu.memory_space<smem>>
    %508 = vector.broadcast %507 : f32 to vector<1x128xf32>
    %509 = arith.mulf %112, %508 : vector<1x128xf32>
    %c14 = arith.constant 14 : index
    %510 = memref.load %arg4[%c14] : memref<16xf32, #tpu.memory_space<smem>>
    %511 = vector.broadcast %510 : f32 to vector<1x128xf32>
    %512 = arith.mulf %225, %511 : vector<1x128xf32>
    %c15 = arith.constant 15 : index
    %513 = memref.load %arg4[%c15] : memref<16xf32, #tpu.memory_space<smem>>
    %514 = vector.broadcast %513 : f32 to vector<1x128xf32>
    %515 = arith.mulf %228, %514 : vector<1x128xf32>
    %516 = arith.addf %494, %497 : vector<1x128xf32>
    %517 = arith.addf %500, %503 : vector<1x128xf32>
    %518 = arith.addf %506, %509 : vector<1x128xf32>
    %519 = arith.addf %512, %515 : vector<1x128xf32>
    %520 = arith.addf %516, %517 : vector<1x128xf32>
    %521 = arith.addf %518, %519 : vector<1x128xf32>
    %522 = arith.addf %520, %521 : vector<1x128xf32>
    %c1_139 = arith.constant 1 : index
    %523 = memref.load %arg5[%c1_139] : memref<2xf32, #tpu.memory_space<smem>>
    %524 = vector.broadcast %523 : f32 to vector<1x128xf32>
    %525 = arith.addf %522, %524 : vector<1x128xf32>
    %cst_140 = arith.constant 0.000000e+00 : f32
    %526 = vector.broadcast %cst_140 : f32 to vector<1x128xf32>
    %527 = arith.maximumf %525, %526 : vector<1x128xf32>
    %c8_141 = arith.constant 8 : index
    %528 = memref.load %arg4[%c8_141] : memref<16xf32, #tpu.memory_space<smem>>
    %529 = vector.broadcast %528 : f32 to vector<1x128xf32>
    %530 = arith.mulf %102, %529 : vector<1x128xf32>
    %c9_142 = arith.constant 9 : index
    %531 = memref.load %arg4[%c9_142] : memref<16xf32, #tpu.memory_space<smem>>
    %532 = vector.broadcast %531 : f32 to vector<1x128xf32>
    %533 = arith.mulf %105, %532 : vector<1x128xf32>
    %c10_143 = arith.constant 10 : index
    %534 = memref.load %arg4[%c10_143] : memref<16xf32, #tpu.memory_space<smem>>
    %535 = vector.broadcast %534 : f32 to vector<1x128xf32>
    %536 = arith.mulf %218, %535 : vector<1x128xf32>
    %c11_144 = arith.constant 11 : index
    %537 = memref.load %arg4[%c11_144] : memref<16xf32, #tpu.memory_space<smem>>
    %538 = vector.broadcast %537 : f32 to vector<1x128xf32>
    %539 = arith.mulf %221, %538 : vector<1x128xf32>
    %c12_145 = arith.constant 12 : index
    %540 = memref.load %arg4[%c12_145] : memref<16xf32, #tpu.memory_space<smem>>
    %541 = vector.broadcast %540 : f32 to vector<1x128xf32>
    %542 = arith.mulf %112, %541 : vector<1x128xf32>
    %c13_146 = arith.constant 13 : index
    %543 = memref.load %arg4[%c13_146] : memref<16xf32, #tpu.memory_space<smem>>
    %544 = vector.broadcast %543 : f32 to vector<1x128xf32>
    %545 = arith.mulf %115, %544 : vector<1x128xf32>
    %c14_147 = arith.constant 14 : index
    %546 = memref.load %arg4[%c14_147] : memref<16xf32, #tpu.memory_space<smem>>
    %547 = vector.broadcast %546 : f32 to vector<1x128xf32>
    %548 = arith.mulf %228, %547 : vector<1x128xf32>
    %c15_148 = arith.constant 15 : index
    %549 = memref.load %arg4[%c15_148] : memref<16xf32, #tpu.memory_space<smem>>
    %550 = vector.broadcast %549 : f32 to vector<1x128xf32>
    %551 = arith.mulf %231, %550 : vector<1x128xf32>
    %552 = arith.addf %530, %533 : vector<1x128xf32>
    %553 = arith.addf %536, %539 : vector<1x128xf32>
    %554 = arith.addf %542, %545 : vector<1x128xf32>
    %555 = arith.addf %548, %551 : vector<1x128xf32>
    %556 = arith.addf %552, %553 : vector<1x128xf32>
    %557 = arith.addf %554, %555 : vector<1x128xf32>
    %558 = arith.addf %556, %557 : vector<1x128xf32>
    %c1_149 = arith.constant 1 : index
    %559 = memref.load %arg5[%c1_149] : memref<2xf32, #tpu.memory_space<smem>>
    %560 = vector.broadcast %559 : f32 to vector<1x128xf32>
    %561 = arith.addf %558, %560 : vector<1x128xf32>
    %cst_150 = arith.constant 0.000000e+00 : f32
    %562 = vector.broadcast %cst_150 : f32 to vector<1x128xf32>
    %563 = arith.maximumf %561, %562 : vector<1x128xf32>
    %c8_151 = arith.constant 8 : index
    %564 = memref.load %arg4[%c8_151] : memref<16xf32, #tpu.memory_space<smem>>
    %565 = vector.broadcast %564 : f32 to vector<1x128xf32>
    %566 = arith.mulf %215, %565 : vector<1x128xf32>
    %c9_152 = arith.constant 9 : index
    %567 = memref.load %arg4[%c9_152] : memref<16xf32, #tpu.memory_space<smem>>
    %568 = vector.broadcast %567 : f32 to vector<1x128xf32>
    %569 = arith.mulf %218, %568 : vector<1x128xf32>
    %c10_153 = arith.constant 10 : index
    %570 = memref.load %arg4[%c10_153] : memref<16xf32, #tpu.memory_space<smem>>
    %571 = vector.broadcast %570 : f32 to vector<1x128xf32>
    %572 = arith.mulf %331, %571 : vector<1x128xf32>
    %c11_154 = arith.constant 11 : index
    %573 = memref.load %arg4[%c11_154] : memref<16xf32, #tpu.memory_space<smem>>
    %574 = vector.broadcast %573 : f32 to vector<1x128xf32>
    %575 = arith.mulf %334, %574 : vector<1x128xf32>
    %c12_155 = arith.constant 12 : index
    %576 = memref.load %arg4[%c12_155] : memref<16xf32, #tpu.memory_space<smem>>
    %577 = vector.broadcast %576 : f32 to vector<1x128xf32>
    %578 = arith.mulf %225, %577 : vector<1x128xf32>
    %c13_156 = arith.constant 13 : index
    %579 = memref.load %arg4[%c13_156] : memref<16xf32, #tpu.memory_space<smem>>
    %580 = vector.broadcast %579 : f32 to vector<1x128xf32>
    %581 = arith.mulf %228, %580 : vector<1x128xf32>
    %c14_157 = arith.constant 14 : index
    %582 = memref.load %arg4[%c14_157] : memref<16xf32, #tpu.memory_space<smem>>
    %583 = vector.broadcast %582 : f32 to vector<1x128xf32>
    %584 = arith.mulf %341, %583 : vector<1x128xf32>
    %c15_158 = arith.constant 15 : index
    %585 = memref.load %arg4[%c15_158] : memref<16xf32, #tpu.memory_space<smem>>
    %586 = vector.broadcast %585 : f32 to vector<1x128xf32>
    %587 = arith.mulf %344, %586 : vector<1x128xf32>
    %588 = arith.addf %566, %569 : vector<1x128xf32>
    %589 = arith.addf %572, %575 : vector<1x128xf32>
    %590 = arith.addf %578, %581 : vector<1x128xf32>
    %591 = arith.addf %584, %587 : vector<1x128xf32>
    %592 = arith.addf %588, %589 : vector<1x128xf32>
    %593 = arith.addf %590, %591 : vector<1x128xf32>
    %594 = arith.addf %592, %593 : vector<1x128xf32>
    %c1_159 = arith.constant 1 : index
    %595 = memref.load %arg5[%c1_159] : memref<2xf32, #tpu.memory_space<smem>>
    %596 = vector.broadcast %595 : f32 to vector<1x128xf32>
    %597 = arith.addf %594, %596 : vector<1x128xf32>
    %cst_160 = arith.constant 0.000000e+00 : f32
    %598 = vector.broadcast %cst_160 : f32 to vector<1x128xf32>
    %599 = arith.maximumf %597, %598 : vector<1x128xf32>
    %c8_161 = arith.constant 8 : index
    %600 = memref.load %arg4[%c8_161] : memref<16xf32, #tpu.memory_space<smem>>
    %601 = vector.broadcast %600 : f32 to vector<1x128xf32>
    %602 = arith.mulf %218, %601 : vector<1x128xf32>
    %c9_162 = arith.constant 9 : index
    %603 = memref.load %arg4[%c9_162] : memref<16xf32, #tpu.memory_space<smem>>
    %604 = vector.broadcast %603 : f32 to vector<1x128xf32>
    %605 = arith.mulf %221, %604 : vector<1x128xf32>
    %c10_163 = arith.constant 10 : index
    %606 = memref.load %arg4[%c10_163] : memref<16xf32, #tpu.memory_space<smem>>
    %607 = vector.broadcast %606 : f32 to vector<1x128xf32>
    %608 = arith.mulf %334, %607 : vector<1x128xf32>
    %c11_164 = arith.constant 11 : index
    %609 = memref.load %arg4[%c11_164] : memref<16xf32, #tpu.memory_space<smem>>
    %610 = vector.broadcast %609 : f32 to vector<1x128xf32>
    %611 = arith.mulf %337, %610 : vector<1x128xf32>
    %c12_165 = arith.constant 12 : index
    %612 = memref.load %arg4[%c12_165] : memref<16xf32, #tpu.memory_space<smem>>
    %613 = vector.broadcast %612 : f32 to vector<1x128xf32>
    %614 = arith.mulf %228, %613 : vector<1x128xf32>
    %c13_166 = arith.constant 13 : index
    %615 = memref.load %arg4[%c13_166] : memref<16xf32, #tpu.memory_space<smem>>
    %616 = vector.broadcast %615 : f32 to vector<1x128xf32>
    %617 = arith.mulf %231, %616 : vector<1x128xf32>
    %c14_167 = arith.constant 14 : index
    %618 = memref.load %arg4[%c14_167] : memref<16xf32, #tpu.memory_space<smem>>
    %619 = vector.broadcast %618 : f32 to vector<1x128xf32>
    %620 = arith.mulf %344, %619 : vector<1x128xf32>
    %c15_168 = arith.constant 15 : index
    %621 = memref.load %arg4[%c15_168] : memref<16xf32, #tpu.memory_space<smem>>
    %622 = vector.broadcast %621 : f32 to vector<1x128xf32>
    %623 = arith.mulf %347, %622 : vector<1x128xf32>
    %624 = arith.addf %602, %605 : vector<1x128xf32>
    %625 = arith.addf %608, %611 : vector<1x128xf32>
    %626 = arith.addf %614, %617 : vector<1x128xf32>
    %627 = arith.addf %620, %623 : vector<1x128xf32>
    %628 = arith.addf %624, %625 : vector<1x128xf32>
    %629 = arith.addf %626, %627 : vector<1x128xf32>
    %630 = arith.addf %628, %629 : vector<1x128xf32>
    %c1_169 = arith.constant 1 : index
    %631 = memref.load %arg5[%c1_169] : memref<2xf32, #tpu.memory_space<smem>>
    %632 = vector.broadcast %631 : f32 to vector<1x128xf32>
    %633 = arith.addf %630, %632 : vector<1x128xf32>
    %cst_170 = arith.constant 0.000000e+00 : f32
    %634 = vector.broadcast %cst_170 : f32 to vector<1x128xf32>
    %635 = arith.maximumf %633, %634 : vector<1x128xf32>
    %636 = arith.maximumf %383, %419 : vector<1x128xf32>
    %637 = arith.maximumf %455, %491 : vector<1x128xf32>
    %638 = arith.maximumf %636, %637 : vector<1x128xf32>
    %639 = arith.maximumf %527, %563 : vector<1x128xf32>
    %640 = arith.maximumf %599, %635 : vector<1x128xf32>
    %641 = arith.maximumf %639, %640 : vector<1x128xf32>
    %c0_171 = arith.constant 0 : index
    %642 = memref.load %arg6[%c0_171] : memref<4xf32, #tpu.memory_space<smem>>
    %643 = vector.broadcast %642 : f32 to vector<1x128xf32>
    %644 = arith.mulf %643, %638 : vector<1x128xf32>
    %c1_172 = arith.constant 1 : index
    %645 = memref.load %arg6[%c1_172] : memref<4xf32, #tpu.memory_space<smem>>
    %646 = vector.broadcast %645 : f32 to vector<1x128xf32>
    %647 = arith.mulf %646, %641 : vector<1x128xf32>
    %648 = arith.addf %644, %647 : vector<1x128xf32>
    %c0_173 = arith.constant 0 : index
    %649 = memref.load %arg7[%c0_173] : memref<2xf32, #tpu.memory_space<smem>>
    %650 = vector.broadcast %649 : f32 to vector<1x128xf32>
    %651 = arith.addf %648, %650 : vector<1x128xf32>
    %cst_174 = arith.constant 0.000000e+00 : f32
    %652 = vector.broadcast %cst_174 : f32 to vector<1x128xf32>
    %653 = arith.maximumf %651, %652 : vector<1x128xf32>
    %c2_175 = arith.constant 2 : index
    %654 = memref.load %arg6[%c2_175] : memref<4xf32, #tpu.memory_space<smem>>
    %655 = vector.broadcast %654 : f32 to vector<1x128xf32>
    %656 = arith.mulf %655, %638 : vector<1x128xf32>
    %c3_176 = arith.constant 3 : index
    %657 = memref.load %arg6[%c3_176] : memref<4xf32, #tpu.memory_space<smem>>
    %658 = vector.broadcast %657 : f32 to vector<1x128xf32>
    %659 = arith.mulf %658, %641 : vector<1x128xf32>
    %660 = arith.addf %656, %659 : vector<1x128xf32>
    %c1_177 = arith.constant 1 : index
    %661 = memref.load %arg7[%c1_177] : memref<2xf32, #tpu.memory_space<smem>>
    %662 = vector.broadcast %661 : f32 to vector<1x128xf32>
    %663 = arith.addf %660, %662 : vector<1x128xf32>
    %cst_178 = arith.constant 0.000000e+00 : f32
    %664 = vector.broadcast %cst_178 : f32 to vector<1x128xf32>
    %665 = arith.maximumf %663, %664 : vector<1x128xf32>
    %c0_179 = arith.constant 0 : index
    %c0_180 = arith.constant 0 : index
    %666 = vector.load %arg8[%c0_179, %c0_180] : memref<10x1xf32, #tpu.memory_space<vmem>>, vector<10x1xf32>
    %667 = vector.broadcast %666 : vector<10x1xf32> to vector<10x128xf32>
    %668 = vector.broadcast %653 : vector<1x128xf32> to vector<10x128xf32>
    %669 = arith.mulf %667, %668 : vector<10x128xf32>
    %c0_181 = arith.constant 0 : index
    %c0_182 = arith.constant 0 : index
    %670 = vector.load %arg9[%c0_181, %c0_182] : memref<10x1xf32, #tpu.memory_space<vmem>>, vector<10x1xf32>
    %671 = vector.broadcast %670 : vector<10x1xf32> to vector<10x128xf32>
    %672 = vector.broadcast %665 : vector<1x128xf32> to vector<10x128xf32>
    %673 = arith.mulf %671, %672 : vector<10x128xf32>
    %674 = arith.addf %669, %673 : vector<10x128xf32>
    %c0_183 = arith.constant 0 : index
    %c0_184 = arith.constant 0 : index
    %675 = vector.load %arg10[%c0_183, %c0_184] : memref<10x1xf32, #tpu.memory_space<vmem>>, vector<10x1xf32>
    %676 = vector.broadcast %675 : vector<10x1xf32> to vector<10x128xf32>
    %677 = arith.addf %674, %676 : vector<10x128xf32>
    %c0_185 = arith.constant 0 : index
    %c0_186 = arith.constant 0 : index
    %678 = vector.load %arg11[%c0_185, %c0_186] : memref<10x128xf32, #tpu.memory_space<vmem>>, vector<10x128xf32>
    tpu.vector_store %arg11[%c0_185, %c0_186], %677 {strides = array<i32>} : memref<10x128xf32, #tpu.memory_space<vmem>>, vector<10x128xf32>,
    return
  }
  func.func @transform_0(%arg0: i32) -> (i32, i32, i32) {
    %c0_i32 = arith.constant 0 : i32
    %c0_i32_0 = arith.constant 0 : i32
    %c0_i32_1 = arith.constant 0 : i32
    return %c0_i32, %c0_i32_0, %arg0 : i32, i32, i32
  }
  func.func @transform_1(%arg0: i32) -> i32 {
    %c0_i32 = arith.constant 0 : i32
    %c0_i32_0 = arith.constant 0 : i32
    return %c0_i32 : i32
  }
  func.func @transform_2(%arg0: i32) -> i32 {
    %c0_i32 = arith.constant 0 : i32
    %c0_i32_0 = arith.constant 0 : i32
    return %c0_i32 : i32
  }
  func.func @transform_3(%arg0: i32) -> i32 {
    %c0_i32 = arith.constant 0 : i32
    %c0_i32_0 = arith.constant 0 : i32
    return %c0_i32 : i32
  }
  func.func @transform_4(%arg0: i32) -> i32 {
    %c0_i32 = arith.constant 0 : i32
    %c0_i32_0 = arith.constant 0 : i32
    return %c0_i32 : i32
  }
  func.func @transform_5(%arg0: i32) -> i32 {
    %c0_i32 = arith.constant 0 : i32
    %c0_i32_0 = arith.constant 0 : i32
    return %c0_i32 : i32
  }
  func.func @transform_6(%arg0: i32) -> i32 {
    %c0_i32 = arith.constant 0 : i32
    %c0_i32_0 = arith.constant 0 : i32
    return %c0_i32 : i32
  }
  func.func @transform_7(%arg0: i32) -> (i32, i32) {
    %c0_i32 = arith.constant 0 : i32
    %c0_i32_0 = arith.constant 0 : i32
    %c0_i32_1 = arith.constant 0 : i32
    return %c0_i32, %c0_i32_0 : i32, i32
  }
  func.func @transform_8(%arg0: i32) -> (i32, i32) {
    %c0_i32 = arith.constant 0 : i32
    %c0_i32_0 = arith.constant 0 : i32
    %c0_i32_1 = arith.constant 0 : i32
    return %c0_i32, %c0_i32_0 : i32, i32
  }
  func.func @transform_9(%arg0: i32) -> (i32, i32) {
    %c0_i32 = arith.constant 0 : i32
    %c0_i32_0 = arith.constant 0 : i32
    %c0_i32_1 = arith.constant 0 : i32
    return %c0_i32, %c0_i32_0 : i32, i32
  }
  func.func @transform_10(%arg0: i32) -> (i32, i32) {
    %c0_i32 = arith.constant 0 : i32
    %c0_i32_0 = arith.constant 0 : i32
    return %c0_i32, %arg0 : i32, i32
  }
}

</mosaic_0001>

<bundles_post_ra>
// kernel: tinynet_forward.1
= control target key start
LH: loop header
LB: loop body
LE: loop exit
PB: predicated region body
PF: predicated region fallthrough
CT: control target
= control target key end

     0   :  { %15 = vsyncpa [#allocation3], 0  ;;  %s1033_s0 = inlined_call_operand.vmem [shape: f32[7,7,128], index: 0, kind: input, shape index: {}]   ;;  %s1034_s1 = inlined_call_operand.vmem [shape: f32[8], index: 1, kind: input, shape index: {}]   ;;  %s1035_s2 = inlined_call_operand.vmem [shape: f32[2], index: 2, kind: input, shape index: {}]   ;;  %s1036_s3 = inlined_call_operand.vmem [shape: f32[16], index: 3, kind: input, shape index: {}]   ;;  %s1037_s4 = inlined_call_operand.vmem [shape: f32[2], index: 4, kind: input, shape index: {}]   ;;  %s1038_s5 = inlined_call_operand.vmem [shape: f32[4], index: 5, kind: input, shape index: {}]   ;;  %s1039_s6 = inlined_call_operand.vmem [shape: f32[2], index: 6, kind: input, shape index: {}]   ;;  %s1040_s7 = inlined_call_operand.vmem [shape: f32[10,1], index: 7, kind: input, shape index: {}]   ;;  %s1041_s8 = inlined_call_operand.vmem [shape: f32[10,1], index: 8, kind: input, shape index: {}]   ;;  %s1042_s9 = inlined_call_operand.vmem [shape: f32[10,1], index: 9, kind: input, shape index: {}]   ;;  %s1043_s10 = inlined_call_operand.vmem [shape: f32[10,128], index: 10, kind: output, shape index: {}]  }
   0x1   :  { %16 = vsyncpa [#allocation5], 0 }
   0x2   :  { %17 = vsyncpa [#allocation8], 0  ;;  %s37_s15 = sshll.u32 %s1035_s2, 4  ;;  %s38_s15 = int_to_ptr.vmem [resolvable:$true] %s37_s15 }
   0x3   :  { %18 = vsyncpa [#allocation11], 0  ;;  %s57_s18 = sshll.u32 %s1037_s4, 4  ;;  %s646_s19 = scalar_lea.vmem %s38_s15, 16  ;;  %s58_s18 = int_to_ptr.vmem [resolvable:$true] %s57_s18 }
   0x4   :  { %p647_p0 = scmp.ne.s32.totalorder %s38_s15, %s646_s19  ;;  %p651_p1 = scmp.lt.s32.totalorder %s38_s15, %s38_s15 }
   0x5   :  { %p652_p2 = scmp.lt.s32.totalorder %s646_s19, %s646_s19 }
   0x7   :  { %p653_p3 = por %p652_p2, %p651_p1 }
   0x9   :  { %p654_p4 = pnand %p653_p3, %p647_p0 }
   0xb   :  { %657 = shalt.err (!%p654_p4)
}
   0xc   :  { %s726_s20 = smov [#allocation4]   ;;  %s658_s21 = scalar_lea.vmem %s58_s18, 16 }
   0xd   :  { %40 = dma.vmem_to_smem %s38_s15, 16, %s726_s20, [#allocation5]  }
   0xe   :  { %p659_p5 = scmp.ne.s32.totalorder %s58_s18, %s658_s21  ;;  %p663_p6 = scmp.lt.s32.totalorder %s58_s18, %s58_s18 }
   0xf   :  { %p664_p7 = scmp.lt.s32.totalorder %s658_s21, %s658_s21 }
  0x11   :  { %p665_p8 = por %p664_p7, %p663_p6 }
  0x13   :  { %p666_p9 = pnand %p665_p8, %p659_p5 }
  0x15   :  { %669 = shalt.err (!%p666_p9)
}
  0x16   :  { %s727_s2 = smov [#allocation7]   ;;  %s27_s23 = sshll.u32 %s1034_s1, 4  ;;  %s28_s23 = int_to_ptr.vmem [resolvable:$true] %s27_s23 }
  0x17   :  { %60 = dma.vmem_to_smem %s58_s18, 16, %s727_s2, [#allocation8]  }
  0x18   :  { %s47_s26 = sshll.u32 %s1036_s3, 4  ;;  %s670_s27 = scalar_lea.vmem %s28_s23, 16  ;;  %s48_s26 = int_to_ptr.vmem [resolvable:$true] %s47_s26 }
  0x19   :  { %p671_p10 = scmp.ne.s32.totalorder %s28_s23, %s670_s27  ;;  %p675_p11 = scmp.lt.s32.totalorder %s28_s23, %s28_s23 }
  0x1a   :  { %p676_p12 = scmp.lt.s32.totalorder %s670_s27, %s670_s27 }
  0x1c   :  { %p677_p13 = por %p676_p12, %p675_p11 }
  0x1e   :  { %p678_p0 = pnand %p677_p13, %p671_p10 }
  0x20   :  { %681 = shalt.err (!%p678_p0)
}
  0x21   :  { %s728_s28 = smov [#allocation2]   ;;  %s682_s29 = scalar_lea.vmem %s48_s26, 16 }
  0x22   :  { %30 = dma.vmem_to_smem %s28_s23, 16, %s728_s28, [#allocation3]  }
  0x23   :  { %p683_p1 = scmp.ne.s32.totalorder %s48_s26, %s682_s29  ;;  %p687_p2 = scmp.lt.s32.totalorder %s48_s26, %s48_s26 }
  0x24   :  { %p688_p3 = scmp.lt.s32.totalorder %s682_s29, %s682_s29 }
  0x26   :  { %p689_p4 = por %p688_p3, %p687_p2 }
  0x28   :  { %p690_p5 = pnand %p689_p4, %p683_p1 }
  0x2a   :  { %693 = shalt.err (!%p690_p5)
}
  0x2b   :  { %s729_s1 = smov [#allocation6]   ;;  %s67_s11 = sshll.u32 %s1038_s5, 4  ;;  %s68_s11 = int_to_ptr.vmem [resolvable:$true] %s67_s11 }
  0x2c   :  { %50 = dma.vmem_to_smem %s48_s26, 16, %s729_s1, [#allocation5]  }
  0x2d   :  { %s77_s14 = sshll.u32 %s1039_s6, 4  ;;  %s694_s15 = scalar_lea.vmem %s68_s11, 16  ;;  %s78_s14 = int_to_ptr.vmem [resolvable:$true] %s77_s14 }
  0x2e   :  { %p695_p6 = scmp.ne.s32.totalorder %s68_s11, %s694_s15  ;;  %p699_p7 = scmp.lt.s32.totalorder %s68_s11, %s68_s11 }
  0x2f   :  { %p700_p8 = scmp.lt.s32.totalorder %s694_s15, %s694_s15 }
  0x31   :  { %p701_p9 = por %p700_p8, %p699_p7 }
  0x33   :  { %p702_p10 = pnand %p701_p9, %p695_p6 }
  0x35   :  { %705 = shalt.err (!%p702_p10)
}
  0x36   :  { %s730_s16 = smov [#allocation9]   ;;  %s706_s17 = scalar_lea.vmem %s78_s14, 16 }
  0x37   :  { %70 = dma.vmem_to_smem %s68_s11, 16, %s730_s16, [#allocation8]  }
  0x38   :  { %p707_p11 = scmp.ne.s32.totalorder %s78_s14, %s706_s17  ;;  %p711_p12 = scmp.lt.s32.totalorder %s78_s14, %s78_s14 }
  0x39   :  { %p712_p13 = scmp.lt.s32.totalorder %s706_s17, %s706_s17 }
  0x3b   :  { %p713_p0 = por %p712_p13, %p711_p12 }
  0x3d   :  { %p714_p1 = pnand %p713_p0, %p707_p11 }
  0x3f   :  { %717 = shalt.err (!%p714_p1)
}
  0x40   :  { %s731_s5 = smov [#allocation10]  }
  0x41   :  { %80 = dma.vmem_to_smem %s78_s14, 16, %s731_s5, [#allocation11]  }
  0x42   :  { %718 = dma.done.wait [#allocation3], 16  }
  0x43   :  { %719 = vsyncadd [#allocation3], 4294967280 }
  0x44   :  { %720 = dma.done.wait [#allocation5], 32  }
  0x45   :  { %721 = vsyncadd [#allocation5], 4294967264 }
  0x46   :  { %722 = dma.done.wait [#allocation8], 32  }
  0x47   :  { %723 = vsyncadd [#allocation8], 4294967264 }
  0x48   :  { %724 = dma.done.wait [#allocation11], 16  }
  0x49   :  { %725 = vsyncadd [#allocation11], 4294967280 }
  0x4a   :  { %105 = sfence }
  0x4b   :  { %v559_v0 = vld [vmem:[%s1041_s8] sm:$0xff]  ;;  %v732_v2 = vmov 0   ;;  %v560_v3 = vld [vmem:[%s1041_s8 + $0x8] sm:$0x3]  ;;  %s109_s23 = sld [smem:[#allocation2]] }
  0x4c   :  { %v541_v1 = vld [vmem:[%s1040_s7] sm:$0xff]  ;;  %645 = vset.pattern.permute.xlu1 %v732_v2  ;;  %644 = vset.pattern.permute.xlu0 %v732_v2  ;;  %v542_v4 = vld [vmem:[%s1040_s7 + $0x8] sm:$0x3]  ;;  %s604_s24 = sld [smem:[#allocation2 + $0x1]]  ;;  %v612_v11 = vld [vmem:[%s1033_s0 + $0x10] sm:$0x7f] }
  0x4d   :  { %563 = vperm.xlu1 %645, %v559_v0   ;;  %545 = vperm.xlu0 %644, %v541_v1   ;;  %s605_s25 = sld [smem:[#allocation2 + $0x2]]  ;;  %v580_v5 = vld [vmem:[%s1042_s9 + $0x8] sm:$0x3]  ;;  %v579_v6 = vld [vmem:[%s1042_s9] sm:$0xff]  ;;  %v848_v18 = vld [vmem:[%s1033_s0 + $0x18] sm:$0x7f] }
  0x4e   :  { %s606_s26 = sld [smem:[#allocation2 + $0x3]]  ;;  %v106_v7 = vld [vmem:[%s1033_s0] sm:$0x7f]  ;;  %v603_v8 = vld [vmem:[%s1033_s0 + $0x8] sm:$0x7f] }
  0x4f   :  { %s607_s11 = sld [smem:[#allocation2 + $0x4]] }
  0x50   :  { %s608_s12 = sld [smem:[#allocation2 + $0x5]] }
  0x51   :  { %568 = vperm.xlu1 %645, %v560_v3   ;;  %550 = vperm.xlu0 %644, %v542_v4   ;;  %v830_v9 = vstv %s109_s23  ;;  %s609_s13 = sld [smem:[#allocation2 + $0x6]] }
  0x52   :  { %v832_v10 = vstv %s604_s24  ;;  %s610_s9 = sld [smem:[#allocation2 + $0x7]]  ;;  %v111_v15 = vmul.f32 %v830_v9, %v106_v7  ;;  %v161_v17 = vmul.f32 %v603_v8, %v830_v9  ;;  %v203_v25 = vmul.f32 %v612_v11, %v830_v9 }
  0x53   :  { %v114_v12 = vmul.f32 %v832_v10, %v106_v7  ;;  %v838_v13 = vstv %s605_s25  ;;  %v162_v14 = vmul.f32 %v603_v8, %v832_v10  ;;  %s853_s5 = sld [smem:[#allocation4]]  ;;  %v204_v26 = vmul.f32 %v612_v11, %v832_v10 }
  0x54   :  { %v842_v16 = vstv %s606_s26  ;;  %v117_v19 = vmul.f32 %v603_v8, %v838_v13  ;;  %v163_v29 = vmul.f32 %v612_v11, %v838_v13  ;;  %s611_s6 = sld [smem:[#allocation4 + $0x1]]  ;;  %v205_v49 = vmul.f32 %v848_v18, %v838_v13 }
  0x55   :  { %588 = vperm.xlu1 %645, %v580_v5   ;;  %583 = vperm.xlu0 %644, %v579_v6   ;;  %v120_v20 = vmul.f32 %v603_v8, %v842_v16  ;;  %v122_v21 = vrot.slane %v114_v12, 1  ;;  %v164_v22 = vmul.f32 %v612_v11, %v842_v16  ;;  %v855_v23 = vstv %s607_s11  ;;  %v614_v5 = vld [vmem:[%s1033_s0 + $0x20] sm:$0x7f]  ;;  %s947_s22 = sld [smem:[#allocation6 + $0x1]] }
  0x56   :  { %v166_v24 = vrot.slane %v162_v14, 1  ;;  %v859_v28 = vstv %s608_s12  ;;  %v206_v30 = vmul.f32 %v848_v18, %v842_v16  ;;  %v136_v36 = vmul.f32 %v855_v23, %v106_v7  ;;  %s951_s23 = sld [smem:[#allocation6 + $0x2]] }
  0x57   :  { %v126_v27 = vrot.slane %v120_v20, 1  ;;  %v124_v31 = vadd.f32 %v122_v21, %v111_v15  ;;  %v139_v32 = vmul.f32 %v859_v28, %v106_v7  ;;  %v865_v33 = vstv %s609_s13  ;;  %s953_s24 = sld [smem:[#allocation6 + $0x3]] }
  0x58   :  { %v170_v34 = vrot.slane %v164_v22, 1  ;;  %v868_v37 = vstv %s610_s9  ;;  %v168_v38 = vadd.f32 %v166_v24, %v161_v17  ;;  %v142_v39 = vmul.f32 %v603_v8, %v865_v33  ;;  %s955_s25 = sld [smem:[#allocation6 + $0x5]] }
  0x59   :  { %v128_v35 = vadd.f32 %v126_v27, %v117_v19  ;;  %v145_v40 = vmul.f32 %v603_v8, %v868_v37  ;;  %v147_v41 = vrot.slane %v139_v32, 1  ;;  %v176_v42 = vmul.f32 %v603_v8, %v855_v23  ;;  %s958_s26 = sld [smem:[#allocation6 + $0x7]] }
  0x5a   :  { %v172_v43 = vadd.f32 %v170_v34, %v163_v29  ;;  %v177_v44 = vmul.f32 %v603_v8, %v859_v28  ;;  %v178_v45 = vmul.f32 %v612_v11, %v865_v33  ;;  %v179_v46 = vmul.f32 %v612_v11, %v868_v37  ;;  %s961_s27 = sld [smem:[#allocation6 + $0x4]] }
  0x5b   :  { %v129_v47 = vadd.f32 %v128_v35, %v124_v31  ;;  %v151_v48 = vrot.slane %v145_v40, 1  ;;  %v208_v50 = vrot.slane %v204_v26, 1  ;;  %v149_v51 = vadd.f32 %v147_v41, %v136_v36  ;;  %v615_v36 = vld [vmem:[%s1033_s0 + $0x28] sm:$0x7f]  ;;  %s963_s28 = sld [smem:[#allocation6 + $0x6]] }
  0x5c   :  { %v181_v52 = vrot.slane %v177_v44, 1  ;;  %v185_v53 = vrot.slane %v179_v46, 1  ;;  %v212_v54 = vrot.slane %v206_v30, 1  ;;  %v879_v55 = vstv %s853_s5  ;;  %s965_s29 = sld [smem:[#allocation6 + $0x8]] }
  0x5d   :  { %v153_v56 = vadd.f32 %v151_v48, %v142_v39  ;;  %v219_v57 = vmul.f32 %v612_v11, %v859_v28  ;;  %v173_v58 = vadd.f32 %v172_v43, %v168_v38  ;;  %v218_v61 = vmul.f32 %v612_v11, %v855_v23  ;;  %s968_s1 = sld [smem:[#allocation6 + $0x9]] }
  0x5e   :  { %v183_v59 = vadd.f32 %v181_v52, %v176_v42  ;;  %v187_v60 = vadd.f32 %v185_v53, %v178_v45  ;;  %v210_v62 = vadd.f32 %v208_v50, %v203_v25  ;;  %v214_v63 = vadd.f32 %v212_v54, %v205_v49  ;;  %s973_s3 = sld [smem:[#allocation6 + $0xa]] }
  0x5f   :  { %v220_v0 = vmul.f32 %v848_v18, %v865_v33  ;;  %v221_v1 = vmul.f32 %v848_v18, %v868_v37  ;;  %v888_v2 = vadd.f32 %v879_v55, %v129_v47  ;;  %v154_v3 = vadd.f32 %v153_v56, %v149_v51  ;;  %s979_s8 = sld [smem:[#allocation6 + $0xb]] }
  0x60   :  { %v223_v4 = vrot.slane %v219_v57, 1  ;;  %v893_v6 = vstv %s611_s6  ;;  %v188_v7 = vadd.f32 %v187_v60, %v183_v59  ;;  %v236_v11 = vmul.f32 %v848_v18, %v832_v10  ;;  %s982_s30 = sld [smem:[#allocation6 + $0xd]] }
  0x61   :  { %v227_v8 = vrot.slane %v221_v1, 1  ;;  %v898_v12 = vadd.f32 %v173_v58, %v879_v55  ;;  %v235_v15 = vmul.f32 %v848_v18, %v830_v9  ;;  %v215_v17 = vadd.f32 %v214_v63, %v210_v62  ;;  %v616_v58 = vld [vmem:[%s1033_s0 + $0x30] sm:$0x7f]  ;;  %s944_s0 = sld [smem:[#allocation6]] }
  0x62   :  { %v225_v14 = vadd.f32 %v223_v4, %v218_v61  ;;  %v237_v20 = vmul.f32 %v614_v5, %v838_v13  ;;  %v238_v21 = vmul.f32 %v614_v5, %v842_v16  ;;  %v133_v22 = vmax.f32 %v888_v2, 0.0  ;;  %s988_s7 = sld [smem:[#allocation6 + $0xf]] }
  0x63   :  { %v229_v19 = vadd.f32 %v227_v8, %v220_v0  ;;  %v906_v24 = vadd.f32 %v893_v6, %v154_v3  ;;  %v240_v25 = vrot.slane %v236_v11, 1  ;;  %v909_v26 = vadd.f32 %v188_v7, %v893_v6  ;;  %s997_s11 = sld [smem:[#allocation6 + $0xc]] }
  0x64   :  { %v244_v27 = vrot.slane %v238_v21, 1  ;;  %v250_v29 = vmul.f32 %v848_v18, %v855_v23  ;;  %v251_v30 = vmul.f32 %v848_v18, %v859_v28  ;;  %v252_v34 = vmul.f32 %v614_v5, %v865_v33  ;;  %s1000_s12 = sld [smem:[#allocation6 + $0xe]] }
  0x65   :  { %v230_v31 = vadd.f32 %v229_v19, %v225_v14  ;;  %v242_v32 = vadd.f32 %v240_v25, %v235_v15  ;;  %v253_v35 = vmul.f32 %v614_v5, %v868_v37  ;;  %v175_v38 = vmax.f32 %v898_v12, 0.0  ;;  %s392_s13 = sld [smem:[#allocation7]] }
  0x66   :  { %v216_v39 = vadd.f32 %v215_v17, %v879_v55  ;;  %v246_v40 = vadd.f32 %v244_v27, %v237_v20  ;;  %v255_v41 = vrot.slane %v251_v30, 1  ;;  %v158_v42 = vmax.f32 %v906_v24, 0.0  ;;  %s632_s14 = sld [smem:[#allocation7 + $0x1]] }
  0x67   :  { %v259_v43 = vrot.slane %v253_v35, 1  ;;  %v277_v18 = vmul.f32 %v614_v5, %v830_v9  ;;  %v278_v44 = vmul.f32 %v614_v5, %v832_v10  ;;  %v279_v47 = vmul.f32 %v615_v36, %v838_v13  ;;  %s634_s15 = sld [smem:[#allocation9 + $0x2]] }
  0x68   :  { %v247_v45 = vadd.f32 %v246_v40, %v242_v32  ;;  %v257_v46 = vadd.f32 %v255_v41, %v250_v29  ;;  %v280_v48 = vmul.f32 %v615_v36, %v842_v16  ;;  %v190_v49 = vmax.f32 %v909_v26, 0.0  ;;  %s635_s9 = sld [smem:[#allocation9 + $0x3]] }
  0x69   :  { %v231_v50 = vadd.f32 %v230_v31, %v893_v6  ;;  %v261_v51 = vadd.f32 %v259_v43, %v252_v34  ;;  %v282_v52 = vrot.slane %v278_v44, 1  ;;  %v292_v56 = vmul.f32 %v614_v5, %v855_v23  ;;  %s519_s16 = sld [smem:[#allocation9]] }
  0x6a   :  { %v248_v53 = vadd.f32 %v247_v45, %v879_v55  ;;  %v286_v54 = vrot.slane %v280_v48, 1  ;;  %v293_v57 = vmul.f32 %v614_v5, %v859_v28  ;;  %v294_v61 = vmul.f32 %v615_v36, %v865_v33  ;;  %s633_s17 = sld [smem:[#allocation9 + $0x1]] }
  0x6b   :  { %v262_v59 = vadd.f32 %v261_v51, %v257_v46  ;;  %v284_v60 = vadd.f32 %v282_v52, %v277_v18  ;;  %v295_v62 = vmul.f32 %v615_v36, %v868_v37  ;;  %v309_v1 = vmul.f32 %v615_v36, %v830_v9  ;;  %s636_s5 = sld [smem:[#allocation10 + $0x1]] }
  0x6c   :  { %v288_v63 = vadd.f32 %v286_v54, %v279_v47  ;;  %v297_v0 = vrot.slane %v293_v57, 1  ;;  %v310_v2 = vmul.f32 %v615_v36, %v832_v10  ;;  %v311_v5 = vmul.f32 %v616_v58, %v838_v13  ;;  %s526_s6 = sld [smem:[#allocation10]] }
  0x6d   :  { %v263_v3 = vadd.f32 %v262_v59, %v893_v6  ;;  %v301_v4 = vrot.slane %v295_v62, 1  ;;  %v312_v7 = vmul.f32 %v616_v58, %v842_v16  ;;  %v217_v8 = vmax.f32 %v216_v39, 0.0 }
  0x6e   :  { %v289_v11 = vadd.f32 %v288_v63, %v284_v60  ;;  %v299_v12 = vadd.f32 %v297_v0, %v292_v56  ;;  %v314_v14 = vrot.slane %v310_v2, 1  ;;  %v232_v15 = vmax.f32 %v231_v50, 0.0 }
  0x6f   :  { %v249_v17 = vmax.f32 %v248_v53, 0.0  ;;  %v303_v19 = vadd.f32 %v301_v4, %v294_v61  ;;  %v318_v20 = vrot.slane %v312_v7, 1  ;;  %v264_v21 = vmax.f32 %v263_v3, 0.0 }
  0x70   :  { %v316_v24 = vadd.f32 %v314_v14, %v309_v1  ;;  %v324_v9 = vmul.f32 %v615_v36, %v855_v23  ;;  %v325_v10 = vmul.f32 %v615_v36, %v859_v28  ;;  %v191_v25 = vmax.f32 %v133_v22, %v175_v38 }
  0x71   :  { %v290_v13 = vadd.f32 %v289_v11, %v879_v55  ;;  %v320_v16 = vadd.f32 %v318_v20, %v311_v5  ;;  %v304_v26 = vadd.f32 %v303_v19, %v299_v12  ;;  %v326_v27 = vmul.f32 %v616_v58, %v865_v33 }
  0x72   :  { %v327_v29 = vmul.f32 %v616_v58, %v868_v37  ;;  %v329_v30 = vrot.slane %v325_v10, 1  ;;  %v196_v31 = vmax.f32 %v158_v42, %v190_v49  ;;  %v265_v23 = vmax.f32 %v217_v8, %v249_v17 }
  0x73   :  { %v321_v32 = vadd.f32 %v320_v16, %v316_v24  ;;  %v270_v28 = vmax.f32 %v232_v15, %v264_v21  ;;  %v291_v35 = vmax.f32 %v290_v13, 0.0  ;;  %v193_v33 = vrot.slane %v191_v25, 1 }
  0x74   :  { %v331_v22 = vadd.f32 %v329_v30, %v324_v9  ;;  %v333_v34 = vrot.slane %v327_v29, 1  ;;  %v305_v37 = vadd.f32 %v304_v26, %v893_v6  ;;  %v198_v39 = vrot.slane %v196_v31, 1 }
  0x75   :  { %v322_v36 = vadd.f32 %v321_v32, %v879_v55  ;;  %v267_v40 = vrot.slane %v265_v23, 1  ;;  %v272_v42 = vrot.slane %v270_v28, 1  ;;  %v195_v55 = vmax.f32 %v191_v25, %v193_v33 }
  0x76   :  { %v335_v38 = vadd.f32 %v333_v34, %v326_v27  ;;  %v306_v44 = vmax.f32 %v305_v37, 0.0  ;;  %v200_v46 = vmax.f32 %v196_v31, %v198_v39  ;;  %v353_v48 = vstv %s947_s22 }
  0x77   :  { %v323_v41 = vmax.f32 %v322_v36, 0.0  ;;  %v970_v47 = vmax.f32 %v265_v23, %v267_v40  ;;  %v975_v49 = vmax.f32 %v270_v28, %v272_v42  ;;  %v359_v51 = vstv %s953_s24 }
  0x78   :  { %v336_v43 = vadd.f32 %v335_v38, %v331_v22  ;;  %v365_v52 = vstv %s955_s25  ;;  %v350_v56 = vstv %s944_s0  ;;  %v985_v57 = vmul.f32 %v353_v48, %v195_v55 }
  0x79   :  { %v339_v18 = vmax.f32 %v291_v35, %v323_v41  ;;  %v356_v58 = vstv %s951_s23  ;;  %v991_v59 = vmul.f32 %v359_v51, %v970_v47  ;;  %v362_v60 = vstv %s961_s27 }
  0x7a   :  { %v337_v45 = vadd.f32 %v336_v43, %v893_v6  ;;  %v371_v6 = vstv %s958_s26  ;;  %v994_v61 = vmul.f32 %v365_v52, %v200_v46  ;;  %v368_v62 = vstv %s963_s28 }
  0x7b   :  { %v341_v53 = vrot.slane %v339_v18, 1  ;;  %v372_v0 = vmul.f32 %v371_v6, %v975_v49  ;;  %v351_v2 = vmul.f32 %v350_v56, %v195_v55  ;;  %v357_v3 = vmul.f32 %v356_v58, %v970_v47 }
  0x7c   :  { %v338_v50 = vmax.f32 %v337_v45, 0.0  ;;  %v363_v4 = vmul.f32 %v362_v60, %v200_v46  ;;  %v369_v5 = vmul.f32 %v368_v62, %v975_v49  ;;  %v397_v7 = vmul.f32 %v353_v48, %v970_v47 }
  0x7d   :  { %v343_v1 = vmax.f32 %v339_v18, %v341_v53  ;;  %v374_v11 = vrot.slane %v985_v57, 2  ;;  %v378_v12 = vrot.slane %v991_v59, 2  ;;  %v382_v14 = vrot.slane %v994_v61, 2 }
  0x7e   :  { %v344_v54 = vmax.f32 %v306_v44, %v338_v50  ;;  %v386_v15 = vrot.slane %v372_v0, 2  ;;  %v396_v17 = vmul.f32 %v350_v56, %v970_v47  ;;  %v401_v19 = vmul.f32 %v365_v52, %v975_v49 }
  0x7f   :  { %v429_v20 = vstv %s968_s1  ;;  %v399_v21 = vmul.f32 %v359_v51, %v343_v1  ;;  %v400_v24 = vmul.f32 %v362_v60, %v975_v49  ;;  %v435_v9 = vstv %s979_s8 }
  0x80   :  { %v346_v63 = vrot.slane %v344_v54, 1  ;;  %v441_v10 = vstv %s982_s30  ;;  %v405_v25 = vrot.slane %v397_v7, 2  ;;  %v426_v13 = vstv %s965_s29 }
  0x81   :  { %v432_v16 = vstv %s973_s3  ;;  %v447_v26 = vstv %s988_s7  ;;  %v398_v27 = vmul.f32 %v356_v58, %v343_v1  ;;  %v430_v30 = vmul.f32 %v429_v20, %v195_v55 }
  0x82   :  { %v348_v8 = vmax.f32 %v344_v54, %v346_v63  ;;  %v438_v31 = vstv %s997_s11  ;;  %v413_v23 = vrot.slane %v401_v19, 2  ;;  %v436_v32 = vmul.f32 %v435_v9, %v970_v47 }
  0x83   :  { %v442_v28 = vmul.f32 %v441_v10, %v200_v46  ;;  %v444_v22 = vstv %s1000_s12  ;;  %v409_v34 = vrot.slane %v399_v21, 2  ;;  %v427_v35 = vmul.f32 %v426_v13, %v195_v55 }
  0x84   :  { %v403_v29 = vmul.f32 %v371_v6, %v348_v8  ;;  %v433_v36 = vmul.f32 %v432_v16, %v970_v47  ;;  %v448_v33 = vmul.f32 %v447_v26, %v975_v49  ;;  %v402_v37 = vmul.f32 %v368_v62, %v348_v8 }
  0x85   :  { %v439_v38 = vmul.f32 %v438_v31, %v200_v46  ;;  %v473_v39 = vmul.f32 %v429_v20, %v970_v47  ;;  %v475_v40 = vmul.f32 %v435_v9, %v343_v1  ;;  %v445_v42 = vmul.f32 %v444_v22, %v975_v49 }
  0x86   :  { %v417_v41 = vrot.slane %v403_v29, 2  ;;  %v450_v43 = vrot.slane %v430_v30, 2  ;;  %v477_v18 = vmul.f32 %v441_v10, %v975_v49  ;;  %v454_v44 = vrot.slane %v436_v32, 2 }
  0x87   :  { %v458_v45 = vrot.slane %v442_v28, 2  ;;  %v472_v48 = vmul.f32 %v426_v13, %v970_v47  ;;  %v479_v55 = vmul.f32 %v447_v26, %v348_v8  ;;  %v462_v50 = vrot.slane %v448_v33, 2 }
  0x88   :  { %v474_v51 = vmul.f32 %v432_v16, %v343_v1  ;;  %v476_v52 = vmul.f32 %v438_v31, %v975_v49  ;;  %v478_v53 = vmul.f32 %v444_v22, %v348_v8  ;;  %v481_v46 = vrot.slane %v473_v39, 2 }
  0x89   :  { %v485_v6 = vrot.slane %v475_v40, 2  ;;  %v489_v54 = vrot.slane %v477_v18, 2  ;;  %v493_v56 = vrot.slane %v479_v55, 2  ;;  %v376_v57 = vadd.f32 %v374_v11, %v351_v2 }
  0x8a   :  { %v380_v58 = vadd.f32 %v378_v12, %v357_v3  ;;  %v384_v59 = vadd.f32 %v382_v14, %v363_v4  ;;  %v388_v60 = vadd.f32 %v386_v15, %v369_v5  ;;  %v407_v61 = vadd.f32 %v405_v25, %v396_v17 }
  0x8b   :  { %v411_v62 = vadd.f32 %v409_v34, %v398_v27  ;;  %v415_v63 = vadd.f32 %v413_v23, %v400_v24  ;;  %v419_v0 = vadd.f32 %v417_v41, %v402_v37  ;;  %v452_v7 = vadd.f32 %v450_v43, %v427_v35 }
  0x8c   :  { %v456_v47 = vadd.f32 %v454_v44, %v433_v36  ;;  %v460_v19 = vadd.f32 %v458_v45, %v439_v38  ;;  %v464_v20 = vadd.f32 %v462_v50, %v445_v42  ;;  %v483_v1 = vadd.f32 %v481_v46, %v472_v48 }
  0x8d   :  { %v487_v49 = vadd.f32 %v485_v6, %v474_v51  ;;  %v491_v8 = vadd.f32 %v489_v54, %v476_v52  ;;  %v495_v21 = vadd.f32 %v493_v56, %v478_v53  ;;  %v389_v9 = vadd.f32 %v380_v58, %v376_v57 }
  0x8e   :  { %v390_v10 = vadd.f32 %v388_v60, %v384_v59  ;;  %v420_v2 = vadd.f32 %v411_v62, %v407_v61  ;;  %v421_v3 = vadd.f32 %v419_v0, %v415_v63  ;;  %v465_v4 = vadd.f32 %v456_v47, %v452_v7 }
  0x8f   :  { %v466_v5 = vadd.f32 %v464_v20, %v460_v19  ;;  %v496_v11 = vadd.f32 %v487_v49, %v483_v1  ;;  %v497_v12 = vadd.f32 %v495_v21, %v491_v8  ;;  %v393_v25 = vstv %s392_s13 }
  0x90   :  { %v391_v14 = vadd.f32 %v390_v10, %v389_v9  ;;  %v422_v15 = vadd.f32 %v421_v3, %v420_v2  ;;  %v469_v13 = vstv %s632_s14  ;;  %v531_v41 = vstv %s634_s15 }
  0x91   :  { %v467_v17 = vadd.f32 %v466_v5, %v465_v4  ;;  %v498_v24 = vadd.f32 %v497_v12, %v496_v11  ;;  %v534_v42 = vstv %s635_s9  ;;  %v520_v43 = vstv %s519_s16 }
  0x92   :  { %v394_v16 = vadd.f32 %v393_v25, %v391_v14  ;;  %v423_v26 = vadd.f32 %v422_v15, %v393_v25  ;;  %v523_v18 = vstv %s633_s17  ;;  %v553_v50 = vlaneseq }
  0x93   :  { %v470_v27 = vadd.f32 %v469_v13, %v467_v17  ;;  %v499_v29 = vadd.f32 %v498_v24, %v469_v13  ;;  %v538_v53 = vstv %s636_s5  ;;  %v527_v46 = vstv %s526_s6 }
  0x94   :  { %v395_v30 = vmax.f32 %v394_v16, 0.0  ;;  %v424_v31 = vmax.f32 %v423_v26, 0.0  ;;  %v554_v6 = vshrl.u32 %v553_v50, 7 }
  0x95   :  { %v471_v23 = vmax.f32 %v470_v27, 0.0  ;;  %v500_v32 = vmax.f32 %v499_v29, 0.0 }
  0x96   :  { %v502_v28 = vrot.slane %v395_v30, 2  ;;  %v506_v22 = vrot.slane %v424_v31, 2  ;;  %v555_v57 = vsub.s32 0, %v554_v6 }
  0x97   :  { %v511_v34 = vrot.slane %v471_v23, 2  ;;  %v515_v35 = vrot.slane %v500_v32, 2 }
  0x98   :  { %v504_v36 = vmax.f32 %v395_v30, %v502_v28  ;;  %v508_v33 = vmax.f32 %v424_v31, %v506_v22 }
  0x99   :  { %v513_v37 = vmax.f32 %v471_v23, %v511_v34  ;;  %v517_v38 = vmax.f32 %v500_v32, %v515_v35 }
  0x9a   :  { %v509_v39 = vmax.f32 %v504_v36, %v508_v33 }
  0x9b   :  { %v518_v40 = vmax.f32 %v513_v37, %v517_v38 }
  0x9c   :  { %v532_v44 = vmul.f32 %v531_v41, %v509_v39  ;;  %v521_v48 = vmul.f32 %v520_v43, %v509_v39 }
  0x9d   :  { %v535_v45 = vmul.f32 %v534_v42, %v518_v40  ;;  %v524_v55 = vmul.f32 %v523_v18, %v518_v40 }
  0x9f   :  { %v536_v51 = vadd.f32 %v535_v45, %v532_v44  ;;  %v525_v52 = vadd.f32 %v524_v55, %v521_v48 }
  0xa1   :  { %v539_v54 = vadd.f32 %v538_v53, %v536_v51  ;;  %v528_v56 = vadd.f32 %v527_v46, %v525_v52 }
  0xa3   :  { %v540_v58 = vmax.f32 %v539_v54, 0.0  ;;  %v529_v59 = vmax.f32 %v528_v56, 0.0 }
  0xa5   :  { %v574_v60 = vrot.slane %v540_v58, %v555_v57  ;;  %v556_v61 = vrot.slane %v529_v59, %v555_v57 }
  0xc8   :  { %v564_v62 = vpop.permute.xlu1 %563  ;;  %v546_v63 = vpop.permute.xlu0 %545 }
  0xc9   :  { %v575_v0 = vmul.f32 %v574_v60, %v564_v62  ;;  %v557_v7 = vmul.f32 %v556_v61, %v546_v63 }
  0xcb   :  { %v577_v8 = vadd.f32 %v575_v0, %v557_v7 }
  0xcc   :  { %v569_v47 = vpop.permute.xlu1 %568  ;;  %v551_v19 = vpop.permute.xlu0 %550 }
  0xcd   :  { %v576_v20 = vmul.f32 %v574_v60, %v569_v47  ;;  %v558_v1 = vmul.f32 %v556_v61, %v551_v19 }
  0xcf   :  { %v578_v49 = vadd.f32 %v576_v20, %v558_v1 }
  0xd0   :  { %v589_v21 = vpop.permute.xlu1 %588  ;;  %v584_v9 = vpop.permute.xlu0 %583 }
  0xd1   :  { %v592_v10 = vadd.f32 %v589_v21, %v578_v49  ;;  %v591_v2 = vadd.f32 %v584_v9, %v577_v8 }
  0xd3   :  { %594 = vst [vmem:[%s1043_s10 + $0x8] sm:$0x3] %v592_v10  ;;  %593 = vst [vmem:[%s1043_s10] sm:$0xff] %v591_v2 }
  0xd4   :  { %599 = vsyncpa [#allocation3], 1 }
  0xd5   :  { %600 = vsyncpa [#allocation5], 1 }
  0xd6   :  { %601 = vsyncpa [#allocation8], 1 }
  0xd7   :  { %602 = vsyncpa [#allocation11], 1 }

</bundles_post_ra>
